<compile_context>
chip_gen: v7x
topology: tpu7x:2x2x1
jax: 0.10.0
libtpu: 0.0.40
codegen_flags: <defaults>
</compile_context>

<pallas_src>
import functools
import math

import jax
import jax.numpy as jnp
import numpy as np
from jax.experimental import pallas as pl
from jax.experimental.pallas import tpu as pltpu


# ---------------------------------------------------------------------------
# Fused Pallas kernel: one grid step == one batch element.
# ---------------------------------------------------------------------------
def _fused_gcn_encoder_kernel(
        x_ref, a_ref, a2_ref, a3_ref,
        g1w1_ref, g1w2_ref, g2w1_ref, g2w2_ref, g3w1_ref, g3w2_ref,
        ffn_w_ref, ffn_b_ref,
        wq_ref, wk_ref, wv_ref, w1_ref, w2_ref,
        embed_ref, out_ref,
        *, n_heads, d_k, d_v):
    f32 = jnp.float32

    def mm(a, b):
        return jnp.dot(a, b, preferred_element_type=f32)

    # ---------------- AST_Model: GCN stack + ffn (all in registers/VMEM) ----
    def gcn_two(h_in, adj, w1, w2):
        # relu(adj @ (x @ w1)) ; dropout == identity ; relu(adj @ (h @ w2)) + h
        # TODO(synk): F.dropout skipped (inference-mode identity, deterministic).
        h = jnp.maximum(mm(adj, mm(h_in, w1)), 0.0)
        return jnp.maximum(mm(adj, mm(h, w2)), 0.0) + h

    x = x_ref[0]                                               # (N, nfeat)
    o1 = gcn_two(x, a_ref[0], g1w1_ref[0], g1w2_ref[0])
    o2 = gcn_two(o1, a2_ref[0], g2w1_ref[0], g2w2_ref[0])
    o3 = gcn_two(o2, a3_ref[0], g3w1_ref[0], g3w2_ref[0])
    # gcn4 / gcn5 outputs are dead in the reference forward -> skipped (DCE).

    g = 0.1 * o1 + 0.2 * o2 + 0.7 * o3                        # (N, nout)
    embed = mm(g, ffn_w_ref[...]) + ffn_b_ref[...]            # (N, d_model)
    embed_ref[0] = embed

    # ---------------- final EncoderLayer (only its output is returned) ------
    L, d_model = embed.shape
    xh = jnp.broadcast_to(embed[None], (n_heads, L, d_model))  # (H, L, D)
    q = jnp.einsum('hld,hdk->hlk', xh, wq_ref[...], preferred_element_type=f32)
    k = jnp.einsum('hld,hdk->hlk', xh, wk_ref[...], preferred_element_type=f32)
    v = jnp.einsum('hld,hdv->hlv', xh, wv_ref[...], preferred_element_type=f32)

    scores = jnp.einsum('hlk,hmk->hlm', q, k, preferred_element_type=f32)
    scores = scores * (1.0 / math.sqrt(d_k))
    scores_max = jnp.max(scores, axis=-1, keepdims=True)
    p = jnp.exp(scores - scores_max)
    attn = p / jnp.sum(p, axis=-1, keepdims=True)
    ctx_h = jnp.einsum('hlm,hmv->hlv', attn, v, preferred_element_type=f32)

    # Heads back to (L, H*d_v) == (L, d_model); static leading-dim slices only.
    ctx = jnp.concatenate([ctx_h[h] for h in range(n_heads)], axis=-1)

    # Position-wise FFN (bias-free) + residual + LayerNorm (identity affine).
    h1 = jnp.maximum(mm(ctx, w1_ref[...]), 0.0)
    z = mm(h1, w2_ref[...]) + ctx
    mean = jnp.mean(z, axis=-1, keepdims=True)
    var = jnp.mean((z - mean) ** 2, axis=-1, keepdims=True)
    out_ref[0] = (z - mean) * jax.lax.rsqrt(var + 1e-5)


# ---------------------------------------------------------------------------
# Wrapper (single pallas_call, jitted)
# ---------------------------------------------------------------------------
def _batched_spec(d1, d2):
    return pl.BlockSpec((1, d1, d2), lambda b: (b, 0, 0))


def _shared_spec(shape):
    nd = len(shape)
    return pl.BlockSpec(shape, lambda b: (0,) * nd)


def _split_heads(w, n_heads, d_head):
    # (d_model, H*d_head) -> (H, d_model, d_head); host/XLA side, not in-kernel.
    d_model = w.shape[0]
    return w.reshape(d_model, n_heads, d_head).transpose(1, 0, 2)


@functools.partial(jax.jit, static_argnames=("n_heads", "d_k", "d_v"))
def gcn_encoder_forward(params, x, a, a2, a3, a4, a5, *, n_heads, d_k, d_v):
    del a4, a5  # only feed dead branches (gcn4/gcn5) in the reference forward
    B, N, nfeat = x.shape
    nhid = params["gcn1_w1"].shape[2]
    nout = params["gcn1_w2"].shape[2]
    d_model = params["ffn_w"].shape[1]

    lp = params["layers"][-1]  # only the last layer's output is returned
    wq_h = _split_heads(lp["wq"], n_heads, d_k)
    wk_h = _split_heads(lp["wk"], n_heads, d_k)
    wv_h = _split_heads(lp["wv"], n_heads, d_v)

    kernel = functools.partial(_fused_gcn_encoder_kernel,
                               n_heads=n_heads, d_k=d_k, d_v=d_v)

    embed, out = pl.pallas_call(
        kernel,
        out_shape=(jax.ShapeDtypeStruct((B, N, d_model), jnp.float32),
                   jax.ShapeDtypeStruct((B, N, d_model), jnp.float32)),
        grid=(B,),
        in_specs=[
            _batched_spec(N, nfeat), _batched_spec(N, N),
            _batched_spec(N, N), _batched_spec(N, N),
            _batched_spec(nfeat, nhid), _batched_spec(nhid, nout),
            _batched_spec(nfeat, nhid), _batched_spec(nhid, nout),
            _batched_spec(nfeat, nhid), _batched_spec(nhid, nout),
            _shared_spec(params["ffn_w"].shape), _shared_spec(params["ffn_b"].shape),
            _shared_spec(wq_h.shape), _shared_spec(wk_h.shape), _shared_spec(wv_h.shape),
            _shared_spec(lp["w1"].shape), _shared_spec(lp["w2"].shape),
        ],
        out_specs=(_batched_spec(N, d_model), _batched_spec(N, d_model)),
        compiler_params=pltpu.CompilerParams(
            dimension_semantics=("parallel",)),
    )(x, a, a2, a3,
      params["gcn1_w1"], params["gcn1_w2"],
      params["gcn2_w1"], params["gcn2_w2"],
      params["gcn3_w1"], params["gcn3_w2"],
      params["ffn_w"], params["ffn_b"],
      wq_h, wk_h, wv_h, lp["w1"], lp["w2"])
    return out, embed   # (ast_outputs, ast_embed)


# ---------------------------------------------------------------------------
# Pure-JAX reference (for correctness check only)
# ---------------------------------------------------------------------------
def _reference_forward(params, x, a, a2, a3, *, n_heads, d_k, d_v):
    def gcn_two(h, adj, w1, w2):
        h1 = jax.nn.relu(jnp.einsum('bnm,bmh->bnh', adj,
                                    jnp.einsum('bnf,bfh->bnh', h, w1)))
        h2 = jax.nn.relu(jnp.einsum('bnm,bmh->bnh', adj,
                                    jnp.einsum('bnf,bfh->bnh', h1, w2)))
        return h2 + h1

    o1 = gcn_two(x, a, params["gcn1_w1"], params["gcn1_w2"])
    o2 = gcn_two(o1, a2, params["gcn2_w1"], params["gcn2_w2"])
    o3 = gcn_two(o2, a3, params["gcn3_w1"], params["gcn3_w2"])
    g = 0.1 * o1 + 0.2 * o2 + 0.7 * o3
    embed = jnp.einsum('bnf,fd->bnd', g, params["ffn_w"]) + params["ffn_b"]

    lp = params["layers"][-1]
    B, N, _ = embed.shape

    def proj(w, d_head):
        y = jnp.einsum('bnd,de->bne', embed, w)
        return y.reshape(B, N, n_heads, d_head).transpose(0, 2, 1, 3)

    Q, K = proj(lp["wq"], d_k), proj(lp["wk"], d_k)
    V = proj(lp["wv"], d_v)
    scores = jnp.einsum('bhqk,bhmk->bhqm', Q, K) / math.sqrt(d_k)
    attn = jax.nn.softmax(scores, axis=-1)
    ctx = jnp.einsum('bhqm,bhmv->bhqv', attn, V)
    ctx = ctx.transpose(0, 2, 1, 3).reshape(B, N, n_heads * d_v)

    h1 = jax.nn.relu(jnp.einsum('bnd,df->bnf', ctx, lp["w1"]))
    z = jnp.einsum('bnf,fd->bnd', h1, lp["w2"]) + ctx
    mean = jnp.mean(z, axis=-1, keepdims=True)
    var = jnp.mean((z - mean) ** 2, axis=-1, keepdims=True)
    return (z - mean) * jax.lax.rsqrt(var + 1e-5), embed


# ---------------------------------------------------------------------------
# Parameter init (mirrors the PyTorch module's init ranges)
# ---------------------------------------------------------------------------
def init_params(key, *, nfeat, nhid, nout, d_model, d_k, d_v, d_ff, n_heads,
                n_layers, batch_size):
    keys = iter(jax.random.split(key, 64))

    def gcn_w(in_f, out_f):
        stdv = 1.0 / math.sqrt(in_f)
        return jax.random.uniform(next(keys), (batch_size, in_f, out_f),
                                  jnp.float32, -stdv, stdv)

    def lin_w(in_f, out_f):
        bound = 1.0 / math.sqrt(in_f)
        return jax.random.uniform(next(keys), (in_f, out_f), jnp.float32,
                                  -bound, bound)

    p = {}
    for i in (1, 2, 3):
        p[f"gcn{i}_w1"] = gcn_w(nfeat, nhid)
        p[f"gcn{i}_w2"] = gcn_w(nhid, nout)
    # gcn4/gcn5 exist in the module but their outputs are dead in forward.
    p["gcn4_w"] = gcn_w(nfeat, nhid)
    p["gcn5_w"] = gcn_w(nfeat, nhid)
    p["ffn_w"] = lin_w(nout, d_model)
    p["ffn_b"] = jax.random.uniform(next(keys), (1, d_model), jnp.float32,
                                    -1.0 / math.sqrt(nout), 1.0 / math.sqrt(nout))
    p["layers"] = []
    for _ in range(n_layers):
        p["layers"].append({
            "wq": lin_w(d_model, d_k * n_heads),
            "wk": lin_w(d_model, d_k * n_heads),
            "wv": lin_w(d_model, d_v * n_heads),
            "w1": lin_w(d_model, d_ff),
            "w2": lin_w(d_ff, d_model),
        })
    return p


# ---------------------------------------------------------------------------
# Main
# ---------------------------------------------------------------------------
if __name__ == "__main__":
    # Constraints from the reference: nfeat == nhid == nout, n_heads*d_v == d_model.
    batch_size = 2
    n_nodes = 8
    nfeat = nhid = nout = 16
    d_model = 32
    d_k = d_v = 8
    n_heads = 4
    d_ff = 64
    n_layers = 2

    key = jax.random.PRNGKey(0)
    k_param, k_x, k_a = jax.random.split(key, 3)
    params = init_params(k_param, nfeat=nfeat, nhid=nhid, nout=nout,
                         d_model=d_model, d_k=d_k, d_v=d_v, d_ff=d_ff,
                         n_heads=n_heads, n_layers=n_layers,
                         batch_size=batch_size)

    x = jax.random.normal(k_x, (batch_size, n_nodes, nfeat), jnp.float32)
    adj_keys = jax.random.split(k_a, 5)
    adjs = [jax.random.uniform(ak, (batch_size, n_nodes, n_nodes), jnp.float32)
            for ak in adj_keys]

    ast_outputs, ast_embed = gcn_encoder_forward(
        params, x, *adjs, n_heads=n_heads, d_k=d_k, d_v=d_v)
    jax.block_until_ready((ast_outputs, ast_embed))

    assert ast_outputs.shape == (batch_size, n_nodes, d_model)
    assert ast_embed.shape == (batch_size, n_nodes, d_model)

    # Correctness check against a pure-JAX reference (highest matmul precision).
    with jax.default_matmul_precision("highest"):
        ref_out, ref_embed = _reference_forward(
            params, x, adjs[0], adjs[1], adjs[2],
            n_heads=n_heads, d_k=d_k, d_v=d_v)
    jax.block_until_ready((ref_out, ref_embed))

    def _relerr(got, want):
        got = np.asarray(got)
        want = np.asarray(want)
        return float(np.max(np.abs(got - want)) / (np.max(np.abs(want)) + 1e-9))

    assert _relerr(ast_outputs, ref_out) < 5e-2, "ast_outputs mismatch vs reference"
    assert _relerr(ast_embed, ref_embed) < 5e-2, "ast_embed mismatch vs reference"

    print("KERNEL_OK")
</pallas_src>

<mosaic_0001>
module attributes {stable_mosaic.version = 11 : i64} {
  func.func @_fused_gcn_encoder_kernel(%arg0: i32, %arg1: memref<1x8x16xf32, #tpu.memory_space<vmem>>, %arg2: memref<1x8x8xf32, #tpu.memory_space<vmem>>, %arg3: memref<1x8x8xf32, #tpu.memory_space<vmem>>, %arg4: memref<1x8x8xf32, #tpu.memory_space<vmem>>, %arg5: memref<1x16x16xf32, #tpu.memory_space<vmem>>, %arg6: memref<1x16x16xf32, #tpu.memory_space<vmem>>, %arg7: memref<1x16x16xf32, #tpu.memory_space<vmem>>, %arg8: memref<1x16x16xf32, #tpu.memory_space<vmem>>, %arg9: memref<1x16x16xf32, #tpu.memory_space<vmem>>, %arg10: memref<1x16x16xf32, #tpu.memory_space<vmem>>, %arg11: memref<16x32xf32, #tpu.memory_space<vmem>>, %arg12: memref<1x32xf32, #tpu.memory_space<vmem>>, %arg13: memref<4x32x8xf32, #tpu.memory_space<vmem>>, %arg14: memref<4x32x8xf32, #tpu.memory_space<vmem>>, %arg15: memref<4x32x8xf32, #tpu.memory_space<vmem>>, %arg16: memref<32x64xf32, #tpu.memory_space<vmem>>, %arg17: memref<64x32xf32, #tpu.memory_space<vmem>>, %arg18: memref<1x8x32xf32, #tpu.memory_space<vmem>>, %arg19: memref<1x8x32xf32, #tpu.memory_space<vmem>>) attributes {dimension_semantics = [#tpu.dimension_semantics<parallel>], iteration_bounds = array<i64: 2>, scalar_prefetch = 0 : i64, scratch_operands = 0 : i64, tpu.core_type = #tpu.core_type<tc>, window_params = [{transform_indices = @transform_0, window_bounds = array<i64: 1, 8, 16>}, {transform_indices = @transform_1, window_bounds = array<i64: 1, 8, 8>}, {transform_indices = @transform_2, window_bounds = array<i64: 1, 8, 8>}, {transform_indices = @transform_3, window_bounds = array<i64: 1, 8, 8>}, {transform_indices = @transform_4, window_bounds = array<i64: 1, 16, 16>}, {transform_indices = @transform_5, window_bounds = array<i64: 1, 16, 16>}, {transform_indices = @transform_6, window_bounds = array<i64: 1, 16, 16>}, {transform_indices = @transform_7, window_bounds = array<i64: 1, 16, 16>}, {transform_indices = @transform_8, window_bounds = array<i64: 1, 16, 16>}, {transform_indices = @transform_9, window_bounds = array<i64: 1, 16, 16>}, {pipeline_mode = #tpu.pipeline_mode<synchronous>, transform_indices = @transform_10, window_bounds = array<i64: 16, 32>}, {pipeline_mode = #tpu.pipeline_mode<synchronous>, transform_indices = @transform_11, window_bounds = array<i64: 1, 32>}, {pipeline_mode = #tpu.pipeline_mode<synchronous>, transform_indices = @transform_12, window_bounds = array<i64: 4, 32, 8>}, {pipeline_mode = #tpu.pipeline_mode<synchronous>, transform_indices = @transform_13, window_bounds = array<i64: 4, 32, 8>}, {pipeline_mode = #tpu.pipeline_mode<synchronous>, transform_indices = @transform_14, window_bounds = array<i64: 4, 32, 8>}, {pipeline_mode = #tpu.pipeline_mode<synchronous>, transform_indices = @transform_15, window_bounds = array<i64: 32, 64>}, {pipeline_mode = #tpu.pipeline_mode<synchronous>, transform_indices = @transform_16, window_bounds = array<i64: 64, 32>}, {transform_indices = @transform_17, window_bounds = array<i64: 1, 8, 32>}, {transform_indices = @transform_18, window_bounds = array<i64: 1, 8, 32>}]} {
    %c0 = arith.constant 0 : index
    %c0_0 = arith.constant 0 : index
    %c0_1 = arith.constant 0 : index
    %0 = vector.load %arg1[%c0, %c0_0, %c0_1] : memref<1x8x16xf32, #tpu.memory_space<vmem>>, vector<1x8x16xf32>
    %1 = vector.shape_cast %0 : vector<1x8x16xf32> to vector<8x16xf32>
    %c0_2 = arith.constant 0 : index
    %c0_3 = arith.constant 0 : index
    %c0_4 = arith.constant 0 : index
    %2 = vector.load %arg2[%c0_2, %c0_3, %c0_4] : memref<1x8x8xf32, #tpu.memory_space<vmem>>, vector<1x8x8xf32>
    %3 = vector.shape_cast %2 : vector<1x8x8xf32> to vector<8x8xf32>
    %c0_5 = arith.constant 0 : index
    %c0_6 = arith.constant 0 : index
    %c0_7 = arith.constant 0 : index
    %4 = vector.load %arg5[%c0_5, %c0_6, %c0_7] : memref<1x16x16xf32, #tpu.memory_space<vmem>>, vector<1x16x16xf32>
    %5 = vector.shape_cast %4 : vector<1x16x16xf32> to vector<16x16xf32>
    %c0_8 = arith.constant 0 : index
    %c0_9 = arith.constant 0 : index
    %c0_10 = arith.constant 0 : index
    %6 = vector.load %arg6[%c0_8, %c0_9, %c0_10] : memref<1x16x16xf32, #tpu.memory_space<vmem>>, vector<1x16x16xf32>
    %7 = vector.shape_cast %6 : vector<1x16x16xf32> to vector<16x16xf32>
    %cst = arith.constant dense<0.000000e+00> : vector<8x16xf32>
    %8 = tpu.matmul %1, %5, %cst {dimension_numbers = #tpu.dot_dimension_numbers<[1], [0], [0], [1], [0, 0, 1, 1], [], []>} : vector<8x16xf32>, vector<16x16xf32>, vector<8x16xf32> -> vector<8x16xf32>
    %cst_11 = arith.constant dense<0.000000e+00> : vector<8x16xf32>
    %9 = tpu.matmul %3, %8, %cst_11 {dimension_numbers = #tpu.dot_dimension_numbers<[1], [0], [0], [1], [0, 0, 1, 1], [], []>} : vector<8x8xf32>, vector<8x16xf32>, vector<8x16xf32> -> vector<8x16xf32>
    %cst_12 = arith.constant 0.000000e+00 : f32
    %10 = vector.broadcast %cst_12 : f32 to vector<8x16xf32>
    %11 = arith.maximumf %9, %10 : vector<8x16xf32>
    %cst_13 = arith.constant dense<0.000000e+00> : vector<8x16xf32>
    %12 = tpu.matmul %11, %7, %cst_13 {dimension_numbers = #tpu.dot_dimension_numbers<[1], [0], [0], [1], [0, 0, 1, 1], [], []>} : vector<8x16xf32>, vector<16x16xf32>, vector<8x16xf32> -> vector<8x16xf32>
    %cst_14 = arith.constant dense<0.000000e+00> : vector<8x16xf32>
    %13 = tpu.matmul %3, %12, %cst_14 {dimension_numbers = #tpu.dot_dimension_numbers<[1], [0], [0], [1], [0, 0, 1, 1], [], []>} : vector<8x8xf32>, vector<8x16xf32>, vector<8x16xf32> -> vector<8x16xf32>
    %cst_15 = arith.constant 0.000000e+00 : f32
    %14 = vector.broadcast %cst_15 : f32 to vector<8x16xf32>
    %15 = arith.maximumf %13, %14 : vector<8x16xf32>
    %16 = arith.addf %15, %11 : vector<8x16xf32>
    %c0_16 = arith.constant 0 : index
    %c0_17 = arith.constant 0 : index
    %c0_18 = arith.constant 0 : index
    %17 = vector.load %arg3[%c0_16, %c0_17, %c0_18] : memref<1x8x8xf32, #tpu.memory_space<vmem>>, vector<1x8x8xf32>
    %18 = vector.shape_cast %17 : vector<1x8x8xf32> to vector<8x8xf32>
    %c0_19 = arith.constant 0 : index
    %c0_20 = arith.constant 0 : index
    %c0_21 = arith.constant 0 : index
    %19 = vector.load %arg7[%c0_19, %c0_20, %c0_21] : memref<1x16x16xf32, #tpu.memory_space<vmem>>, vector<1x16x16xf32>
    %20 = vector.shape_cast %19 : vector<1x16x16xf32> to vector<16x16xf32>
    %c0_22 = arith.constant 0 : index
    %c0_23 = arith.constant 0 : index
    %c0_24 = arith.constant 0 : index
    %21 = vector.load %arg8[%c0_22, %c0_23, %c0_24] : memref<1x16x16xf32, #tpu.memory_space<vmem>>, vector<1x16x16xf32>
    %22 = vector.shape_cast %21 : vector<1x16x16xf32> to vector<16x16xf32>
    %cst_25 = arith.constant dense<0.000000e+00> : vector<8x16xf32>
    %23 = tpu.matmul %16, %20, %cst_25 {dimension_numbers = #tpu.dot_dimension_numbers<[1], [0], [0], [1], [0, 0, 1, 1], [], []>} : vector<8x16xf32>, vector<16x16xf32>, vector<8x16xf32> -> vector<8x16xf32>
    %cst_26 = arith.constant dense<0.000000e+00> : vector<8x16xf32>
    %24 = tpu.matmul %18, %23, %cst_26 {dimension_numbers = #tpu.dot_dimension_numbers<[1], [0], [0], [1], [0, 0, 1, 1], [], []>} : vector<8x8xf32>, vector<8x16xf32>, vector<8x16xf32> -> vector<8x16xf32>
    %cst_27 = arith.constant 0.000000e+00 : f32
    %25 = vector.broadcast %cst_27 : f32 to vector<8x16xf32>
    %26 = arith.maximumf %24, %25 : vector<8x16xf32>
    %cst_28 = arith.constant dense<0.000000e+00> : vector<8x16xf32>
    %27 = tpu.matmul %26, %22, %cst_28 {dimension_numbers = #tpu.dot_dimension_numbers<[1], [0], [0], [1], [0, 0, 1, 1], [], []>} : vector<8x16xf32>, vector<16x16xf32>, vector<8x16xf32> -> vector<8x16xf32>
    %cst_29 = arith.constant dense<0.000000e+00> : vector<8x16xf32>
    %28 = tpu.matmul %18, %27, %cst_29 {dimension_numbers = #tpu.dot_dimension_numbers<[1], [0], [0], [1], [0, 0, 1, 1], [], []>} : vector<8x8xf32>, vector<8x16xf32>, vector<8x16xf32> -> vector<8x16xf32>
    %cst_30 = arith.constant 0.000000e+00 : f32
    %29 = vector.broadcast %cst_30 : f32 to vector<8x16xf32>
    %30 = arith.maximumf %28, %29 : vector<8x16xf32>
    %31 = arith.addf %30, %26 : vector<8x16xf32>
    %c0_31 = arith.constant 0 : index
    %c0_32 = arith.constant 0 : index
    %c0_33 = arith.constant 0 : index
    %32 = vector.load %arg4[%c0_31, %c0_32, %c0_33] : memref<1x8x8xf32, #tpu.memory_space<vmem>>, vector<1x8x8xf32>
    %33 = vector.shape_cast %32 : vector<1x8x8xf32> to vector<8x8xf32>
    %c0_34 = arith.constant 0 : index
    %c0_35 = arith.constant 0 : index
    %c0_36 = arith.constant 0 : index
    %34 = vector.load %arg9[%c0_34, %c0_35, %c0_36] : memref<1x16x16xf32, #tpu.memory_space<vmem>>, vector<1x16x16xf32>
    %35 = vector.shape_cast %34 : vector<1x16x16xf32> to vector<16x16xf32>
    %c0_37 = arith.constant 0 : index
    %c0_38 = arith.constant 0 : index
    %c0_39 = arith.constant 0 : index
    %36 = vector.load %arg10[%c0_37, %c0_38, %c0_39] : memref<1x16x16xf32, #tpu.memory_space<vmem>>, vector<1x16x16xf32>
    %37 = vector.shape_cast %36 : vector<1x16x16xf32> to vector<16x16xf32>
    %cst_40 = arith.constant dense<0.000000e+00> : vector<8x16xf32>
    %38 = tpu.matmul %31, %35, %cst_40 {dimension_numbers = #tpu.dot_dimension_numbers<[1], [0], [0], [1], [0, 0, 1, 1], [], []>} : vector<8x16xf32>, vector<16x16xf32>, vector<8x16xf32> -> vector<8x16xf32>
    %cst_41 = arith.constant dense<0.000000e+00> : vector<8x16xf32>
    %39 = tpu.matmul %33, %38, %cst_41 {dimension_numbers = #tpu.dot_dimension_numbers<[1], [0], [0], [1], [0, 0, 1, 1], [], []>} : vector<8x8xf32>, vector<8x16xf32>, vector<8x16xf32> -> vector<8x16xf32>
    %cst_42 = arith.constant 0.000000e+00 : f32
    %40 = vector.broadcast %cst_42 : f32 to vector<8x16xf32>
    %41 = arith.maximumf %39, %40 : vector<8x16xf32>
    %cst_43 = arith.constant dense<0.000000e+00> : vector<8x16xf32>
    %42 = tpu.matmul %41, %37, %cst_43 {dimension_numbers = #tpu.dot_dimension_numbers<[1], [0], [0], [1], [0, 0, 1, 1], [], []>} : vector<8x16xf32>, vector<16x16xf32>, vector<8x16xf32> -> vector<8x16xf32>
    %cst_44 = arith.constant dense<0.000000e+00> : vector<8x16xf32>
    %43 = tpu.matmul %33, %42, %cst_44 {dimension_numbers = #tpu.dot_dimension_numbers<[1], [0], [0], [1], [0, 0, 1, 1], [], []>} : vector<8x8xf32>, vector<8x16xf32>, vector<8x16xf32> -> vector<8x16xf32>
    %cst_45 = arith.constant 0.000000e+00 : f32
    %44 = vector.broadcast %cst_45 : f32 to vector<8x16xf32>
    %45 = arith.maximumf %43, %44 : vector<8x16xf32>
    %46 = arith.addf %45, %41 : vector<8x16xf32>
    %cst_46 = arith.constant 1.000000e-01 : f32
    %47 = vector.broadcast %cst_46 : f32 to vector<8x16xf32>
    %48 = arith.mulf %47, %16 : vector<8x16xf32>
    %cst_47 = arith.constant 2.000000e-01 : f32
    %49 = vector.broadcast %cst_47 : f32 to vector<8x16xf32>
    %50 = arith.mulf %49, %31 : vector<8x16xf32>
    %51 = arith.addf %48, %50 : vector<8x16xf32>
    %cst_48 = arith.constant 0.699999988 : f32
    %52 = vector.broadcast %cst_48 : f32 to vector<8x16xf32>
    %53 = arith.mulf %52, %46 : vector<8x16xf32>
    %54 = arith.addf %51, %53 : vector<8x16xf32>
    %c0_49 = arith.constant 0 : index
    %c0_50 = arith.constant 0 : index
    %55 = vector.load %arg11[%c0_49, %c0_50] : memref<16x32xf32, #tpu.memory_space<vmem>>, vector<16x32xf32>
    %cst_51 = arith.constant dense<0.000000e+00> : vector<8x32xf32>
    %56 = tpu.matmul %54, %55, %cst_51 {dimension_numbers = #tpu.dot_dimension_numbers<[1], [0], [0], [1], [0, 0, 1, 1], [], []>} : vector<8x16xf32>, vector<16x32xf32>, vector<8x32xf32> -> vector<8x32xf32>
    %c0_52 = arith.constant 0 : index
    %c0_53 = arith.constant 0 : index
    %57 = vector.load %arg12[%c0_52, %c0_53] : memref<1x32xf32, #tpu.memory_space<vmem>>, vector<1x32xf32>
    %58 = vector.broadcast %57 : vector<1x32xf32> to vector<8x32xf32>
    %59 = arith.addf %56, %58 : vector<8x32xf32>
    %c0_54 = arith.constant 0 : index
    %c0_55 = arith.constant 0 : index
    %c0_56 = arith.constant 0 : index
    %60 = vector.load %arg18[%c0_54, %c0_55, %c0_56] : memref<1x8x32xf32, #tpu.memory_space<vmem>>, vector<1x8x32xf32>
    %61 = vector.shape_cast %60 : vector<1x8x32xf32> to vector<8x32xf32>
    %62 = vector.shape_cast %59 : vector<8x32xf32> to vector<1x8x32xf32>
    tpu.vector_store %arg18[%c0_54, %c0_55, %c0_56], %62 {strides = array<i32>} : memref<1x8x32xf32, #tpu.memory_space<vmem>>, vector<1x8x32xf32>,
    %63 = vector.shape_cast %59 : vector<8x32xf32> to vector<1x8x32xf32>
    %64 = vector.shape_cast %63 : vector<1x8x32xf32> to vector<1x8x32xf32>
    %65 = vector.broadcast %64 : vector<1x8x32xf32> to vector<4x8x32xf32>
    %c0_57 = arith.constant 0 : index
    %c0_58 = arith.constant 0 : index
    %c0_59 = arith.constant 0 : index
    %66 = vector.load %arg13[%c0_57, %c0_58, %c0_59] : memref<4x32x8xf32, #tpu.memory_space<vmem>>, vector<4x32x8xf32>
    "tpu.trace_start"() <{level = 10 : i32, message = "hld,hdk->hlk"}> : () -> ()
    %cst_60 = arith.constant dense<0.000000e+00> : vector<4x8x8xf32>
    %67 = tpu.matmul %65, %66, %cst_60 {dimension_numbers = #tpu.dot_dimension_numbers<[2], [1], [1], [2], [0, 0, 0, 1, 1, 2], [0], [0]>} : vector<4x8x32xf32>, vector<4x32x8xf32>, vector<4x8x8xf32> -> vector<4x8x8xf32>
    "tpu.trace_stop"() : () -> ()
    %c0_61 = arith.constant 0 : index
    %c0_62 = arith.constant 0 : index
    %c0_63 = arith.constant 0 : index
    %68 = vector.load %arg14[%c0_61, %c0_62, %c0_63] : memref<4x32x8xf32, #tpu.memory_space<vmem>>, vector<4x32x8xf32>
    "tpu.trace_start"() <{level = 10 : i32, message = "hld,hdk->hlk"}> : () -> ()
    %cst_64 = arith.constant dense<0.000000e+00> : vector<4x8x8xf32>
    %69 = tpu.matmul %65, %68, %cst_64 {dimension_numbers = #tpu.dot_dimension_numbers<[2], [1], [1], [2], [0, 0, 0, 1, 1, 2], [0], [0]>} : vector<4x8x32xf32>, vector<4x32x8xf32>, vector<4x8x8xf32> -> vector<4x8x8xf32>
    "tpu.trace_stop"() : () -> ()
    %c0_65 = arith.constant 0 : index
    %c0_66 = arith.constant 0 : index
    %c0_67 = arith.constant 0 : index
    %70 = vector.load %arg15[%c0_65, %c0_66, %c0_67] : memref<4x32x8xf32, #tpu.memory_space<vmem>>, vector<4x32x8xf32>
    "tpu.trace_start"() <{level = 10 : i32, message = "hld,hdv->hlv"}> : () -> ()
    %cst_68 = arith.constant dense<0.000000e+00> : vector<4x8x8xf32>
    %71 = tpu.matmul %65, %70, %cst_68 {dimension_numbers = #tpu.dot_dimension_numbers<[2], [1], [1], [2], [0, 0, 0, 1, 1, 2], [0], [0]>} : vector<4x8x32xf32>, vector<4x32x8xf32>, vector<4x8x8xf32> -> vector<4x8x8xf32>
    "tpu.trace_stop"() : () -> ()
    "tpu.trace_start"() <{level = 10 : i32, message = "hlk,hmk->hlm"}> : () -> ()
    %cst_69 = arith.constant dense<0.000000e+00> : vector<4x8x8xf32>
    %72 = tpu.matmul %67, %69, %cst_69 {dimension_numbers = #tpu.dot_dimension_numbers<[2], [2], [1], [1], [0, 0, 0, 1, 1, 1], [0], [0]>} : vector<4x8x8xf32>, vector<4x8x8xf32>, vector<4x8x8xf32> -> vector<4x8x8xf32>
    "tpu.trace_stop"() : () -> ()
    %cst_70 = arith.constant 0.353553385 : f32
    %73 = vector.broadcast %cst_70 : f32 to vector<4x8x8xf32>
    %74 = arith.mulf %72, %73 : vector<4x8x8xf32>
    %cst_71 = arith.constant dense<0xFF800000> : vector<4x8xf32>
    %75 = vector.multi_reduction <maximumf>, %74, %cst_71 [2] : vector<4x8x8xf32> to vector<4x8xf32>
    %76 = vector.shape_cast %75 : vector<4x8xf32> to vector<4x8x1xf32>
    %77 = vector.broadcast %76 : vector<4x8x1xf32> to vector<4x8x8xf32>
    %78 = arith.subf %74, %77 : vector<4x8x8xf32>
    %79 = math.exp %78 : vector<4x8x8xf32>
    %cst_72 = arith.constant dense<0.000000e+00> : vector<4x8xf32>
    %80 = vector.multi_reduction <add>, %79, %cst_72 [2] : vector<4x8x8xf32> to vector<4x8xf32>
    %81 = vector.shape_cast %80 : vector<4x8xf32> to vector<4x8x1xf32>
    %82 = vector.broadcast %81 : vector<4x8x1xf32> to vector<4x8x8xf32>
    %83 = arith.divf %79, %82 : vector<4x8x8xf32>
    "tpu.trace_start"() <{level = 10 : i32, message = "hlm,hmv->hlv"}> : () -> ()
    %cst_73 = arith.constant dense<0.000000e+00> : vector<4x8x8xf32>
    %84 = tpu.matmul %83, %71, %cst_73 {dimension_numbers = #tpu.dot_dimension_numbers<[2], [1], [1], [2], [0, 0, 0, 1, 1, 2], [0], [0]>} : vector<4x8x8xf32>, vector<4x8x8xf32>, vector<4x8x8xf32> -> vector<4x8x8xf32>
    "tpu.trace_stop"() : () -> ()
    %85 = vector.extract_strided_slice %84 {offsets = [0, 0, 0], sizes = [1, 8, 8], strides = [1, 1, 1]} : vector<4x8x8xf32> to vector<1x8x8xf32>
    %86 = vector.shape_cast %85 : vector<1x8x8xf32> to vector<8x8xf32>
    %87 = vector.extract_strided_slice %84 {offsets = [1, 0, 0], sizes = [1, 8, 8], strides = [1, 1, 1]} : vector<4x8x8xf32> to vector<1x8x8xf32>
    %88 = vector.shape_cast %87 : vector<1x8x8xf32> to vector<8x8xf32>
    %89 = vector.extract_strided_slice %84 {offsets = [2, 0, 0], sizes = [1, 8, 8], strides = [1, 1, 1]} : vector<4x8x8xf32> to vector<1x8x8xf32>
    %90 = vector.shape_cast %89 : vector<1x8x8xf32> to vector<8x8xf32>
    %91 = vector.extract_strided_slice %84 {offsets = [3, 0, 0], sizes = [1, 8, 8], strides = [1, 1, 1]} : vector<4x8x8xf32> to vector<1x8x8xf32>
    %92 = vector.shape_cast %91 : vector<1x8x8xf32> to vector<8x8xf32>
    %93 = tpu.concatenate %86, %88, %90, %92 in 1 : vector<8x8xf32>, vector<8x8xf32>, vector<8x8xf32>, vector<8x8xf32> -> vector<8x32xf32>
    %c0_74 = arith.constant 0 : index
    %c0_75 = arith.constant 0 : index
    %94 = vector.load %arg16[%c0_74, %c0_75] : memref<32x64xf32, #tpu.memory_space<vmem>>, vector<32x64xf32>
    %cst_76 = arith.constant dense<0.000000e+00> : vector<8x64xf32>
    %95 = tpu.matmul %93, %94, %cst_76 {dimension_numbers = #tpu.dot_dimension_numbers<[1], [0], [0], [1], [0, 0, 1, 1], [], []>} : vector<8x32xf32>, vector<32x64xf32>, vector<8x64xf32> -> vector<8x64xf32>
    %cst_77 = arith.constant 0.000000e+00 : f32
    %96 = vector.broadcast %cst_77 : f32 to vector<8x64xf32>
    %97 = arith.maximumf %95, %96 : vector<8x64xf32>
    %c0_78 = arith.constant 0 : index
    %c0_79 = arith.constant 0 : index
    %98 = vector.load %arg17[%c0_78, %c0_79] : memref<64x32xf32, #tpu.memory_space<vmem>>, vector<64x32xf32>
    %cst_80 = arith.constant dense<0.000000e+00> : vector<8x32xf32>
    %99 = tpu.matmul %97, %98, %cst_80 {dimension_numbers = #tpu.dot_dimension_numbers<[1], [0], [0], [1], [0, 0, 1, 1], [], []>} : vector<8x64xf32>, vector<64x32xf32>, vector<8x32xf32> -> vector<8x32xf32>
    %100 = arith.addf %99, %93 : vector<8x32xf32>
    %cst_81 = arith.constant dense<0.000000e+00> : vector<8xf32>
    %101 = vector.multi_reduction <add>, %100, %cst_81 [1] : vector<8x32xf32> to vector<8xf32>
    %102 = vector.shape_cast %101 : vector<8xf32> to vector<8x1xf32>
    %cst_82 = arith.constant 3.200000e+01 : f32
    %103 = vector.broadcast %cst_82 : f32 to vector<8x1xf32>
    %104 = arith.divf %102, %103 : vector<8x1xf32>
    %105 = vector.broadcast %104 : vector<8x1xf32> to vector<8x32xf32>
    %106 = arith.subf %100, %105 : vector<8x32xf32>
    %107 = arith.mulf %106, %106 : vector<8x32xf32>
    %cst_83 = arith.constant dense<0.000000e+00> : vector<8xf32>
    %108 = vector.multi_reduction <add>, %107, %cst_83 [1] : vector<8x32xf32> to vector<8xf32>
    %109 = vector.shape_cast %108 : vector<8xf32> to vector<8x1xf32>
    %cst_84 = arith.constant 3.200000e+01 : f32
    %110 = vector.broadcast %cst_84 : f32 to vector<8x1xf32>
    %111 = arith.divf %109, %110 : vector<8x1xf32>
    %112 = vector.broadcast %104 : vector<8x1xf32> to vector<8x32xf32>
    %113 = arith.subf %100, %112 : vector<8x32xf32>
    %cst_85 = arith.constant 9.99999974E-6 : f32
    %114 = vector.broadcast %cst_85 : f32 to vector<8x1xf32>
    %115 = arith.addf %111, %114 : vector<8x1xf32>
    %116 = math.rsqrt %115 : vector<8x1xf32>
    %117 = vector.broadcast %116 : vector<8x1xf32> to vector<8x32xf32>
    %118 = arith.mulf %113, %117 : vector<8x32xf32>
    %c0_86 = arith.constant 0 : index
    %c0_87 = arith.constant 0 : index
    %c0_88 = arith.constant 0 : index
    %119 = vector.load %arg19[%c0_86, %c0_87, %c0_88] : memref<1x8x32xf32, #tpu.memory_space<vmem>>, vector<1x8x32xf32>
    %120 = vector.shape_cast %119 : vector<1x8x32xf32> to vector<8x32xf32>
    %121 = vector.shape_cast %118 : vector<8x32xf32> to vector<1x8x32xf32>
    tpu.vector_store %arg19[%c0_86, %c0_87, %c0_88], %121 {strides = array<i32>} : memref<1x8x32xf32, #tpu.memory_space<vmem>>, vector<1x8x32xf32>,
    return
  }
  func.func @transform_0(%arg0: i32) -> (i32, i32, i32) {
    %c0_i32 = arith.constant 0 : i32
    %c0_i32_0 = arith.constant 0 : i32
    %c0_i32_1 = arith.constant 0 : i32
    return %arg0, %c0_i32, %c0_i32_0 : i32, i32, i32
  }
  func.func @transform_1(%arg0: i32) -> (i32, i32, i32) {
    %c0_i32 = arith.constant 0 : i32
    %c0_i32_0 = arith.constant 0 : i32
    %c0_i32_1 = arith.constant 0 : i32
    return %arg0, %c0_i32, %c0_i32_0 : i32, i32, i32
  }
  func.func @transform_2(%arg0: i32) -> (i32, i32, i32) {
    %c0_i32 = arith.constant 0 : i32
    %c0_i32_0 = arith.constant 0 : i32
    %c0_i32_1 = arith.constant 0 : i32
    return %arg0, %c0_i32, %c0_i32_0 : i32, i32, i32
  }
  func.func @transform_3(%arg0: i32) -> (i32, i32, i32) {
    %c0_i32 = arith.constant 0 : i32
    %c0_i32_0 = arith.constant 0 : i32
    %c0_i32_1 = arith.constant 0 : i32
    return %arg0, %c0_i32, %c0_i32_0 : i32, i32, i32
  }
  func.func @transform_4(%arg0: i32) -> (i32, i32, i32) {
    %c0_i32 = arith.constant 0 : i32
    %c0_i32_0 = arith.constant 0 : i32
    %c0_i32_1 = arith.constant 0 : i32
    return %arg0, %c0_i32, %c0_i32_0 : i32, i32, i32
  }
  func.func @transform_5(%arg0: i32) -> (i32, i32, i32) {
    %c0_i32 = arith.constant 0 : i32
    %c0_i32_0 = arith.constant 0 : i32
    %c0_i32_1 = arith.constant 0 : i32
    return %arg0, %c0_i32, %c0_i32_0 : i32, i32, i32
  }
  func.func @transform_6(%arg0: i32) -> (i32, i32, i32) {
    %c0_i32 = arith.constant 0 : i32
    %c0_i32_0 = arith.constant 0 : i32
    %c0_i32_1 = arith.constant 0 : i32
    return %arg0, %c0_i32, %c0_i32_0 : i32, i32, i32
  }
  func.func @transform_7(%arg0: i32) -> (i32, i32, i32) {
    %c0_i32 = arith.constant 0 : i32
    %c0_i32_0 = arith.constant 0 : i32
    %c0_i32_1 = arith.constant 0 : i32
    return %arg0, %c0_i32, %c0_i32_0 : i32, i32, i32
  }
  func.func @transform_8(%arg0: i32) -> (i32, i32, i32) {
    %c0_i32 = arith.constant 0 : i32
    %c0_i32_0 = arith.constant 0 : i32
    %c0_i32_1 = arith.constant 0 : i32
    return %arg0, %c0_i32, %c0_i32_0 : i32, i32, i32
  }
  func.func @transform_9(%arg0: i32) -> (i32, i32, i32) {
    %c0_i32 = arith.constant 0 : i32
    %c0_i32_0 = arith.constant 0 : i32
    %c0_i32_1 = arith.constant 0 : i32
    return %arg0, %c0_i32, %c0_i32_0 : i32, i32, i32
  }
  func.func @transform_10(%arg0: i32) -> (i32, i32) {
    %c0_i32 = arith.constant 0 : i32
    %c0_i32_0 = arith.constant 0 : i32
    %c0_i32_1 = arith.constant 0 : i32
    return %c0_i32, %c0_i32_0 : i32, i32
  }
  func.func @transform_11(%arg0: i32) -> (i32, i32) {
    %c0_i32 = arith.constant 0 : i32
    %c0_i32_0 = arith.constant 0 : i32
    %c0_i32_1 = arith.constant 0 : i32
    return %c0_i32, %c0_i32_0 : i32, i32
  }
  func.func @transform_12(%arg0: i32) -> (i32, i32, i32) {
    %c0_i32 = arith.constant 0 : i32
    %c0_i32_0 = arith.constant 0 : i32
    %c0_i32_1 = arith.constant 0 : i32
    %c0_i32_2 = arith.constant 0 : i32
    return %c0_i32, %c0_i32_0, %c0_i32_1 : i32, i32, i32
  }
  func.func @transform_13(%arg0: i32) -> (i32, i32, i32) {
    %c0_i32 = arith.constant 0 : i32
    %c0_i32_0 = arith.constant 0 : i32
    %c0_i32_1 = arith.constant 0 : i32
    %c0_i32_2 = arith.constant 0 : i32
    return %c0_i32, %c0_i32_0, %c0_i32_1 : i32, i32, i32
  }
  func.func @transform_14(%arg0: i32) -> (i32, i32, i32) {
    %c0_i32 = arith.constant 0 : i32
    %c0_i32_0 = arith.constant 0 : i32
    %c0_i32_1 = arith.constant 0 : i32
    %c0_i32_2 = arith.constant 0 : i32
    return %c0_i32, %c0_i32_0, %c0_i32_1 : i32, i32, i32
  }
  func.func @transform_15(%arg0: i32) -> (i32, i32) {
    %c0_i32 = arith.constant 0 : i32
    %c0_i32_0 = arith.constant 0 : i32
    %c0_i32_1 = arith.constant 0 : i32
    return %c0_i32, %c0_i32_0 : i32, i32
  }
  func.func @transform_16(%arg0: i32) -> (i32, i32) {
    %c0_i32 = arith.constant 0 : i32
    %c0_i32_0 = arith.constant 0 : i32
    %c0_i32_1 = arith.constant 0 : i32
    return %c0_i32, %c0_i32_0 : i32, i32
  }
  func.func @transform_17(%arg0: i32) -> (i32, i32, i32) {
    %c0_i32 = arith.constant 0 : i32
    %c0_i32_0 = arith.constant 0 : i32
    %c0_i32_1 = arith.constant 0 : i32
    return %arg0, %c0_i32, %c0_i32_0 : i32, i32, i32
  }
  func.func @transform_18(%arg0: i32) -> (i32, i32, i32) {
    %c0_i32 = arith.constant 0 : i32
    %c0_i32_0 = arith.constant 0 : i32
    %c0_i32_1 = arith.constant 0 : i32
    return %arg0, %c0_i32, %c0_i32_0 : i32, i32, i32
  }
}

</mosaic_0001>

<bundles_post_ra>
// kernel: gcn_encoder_forward.1
= control target key start
LH: loop header
LB: loop body
LE: loop exit
PB: predicated region body
PF: predicated region fallthrough
CT: control target
= control target key end

     0   :  { %s5112_s0 = inlined_call_operand.vmem [shape: f32[2,8,16], index: 0, kind: input, shape index: {}]   ;;  %s5113_s1 = inlined_call_operand.vmem [shape: f32[2,8,8], index: 1, kind: input, shape index: {}]   ;;  %s5114_s2 = inlined_call_operand.vmem [shape: f32[2,8,8], index: 2, kind: input, shape index: {}]   ;;  %s5115_s3 = inlined_call_operand.vmem [shape: f32[2,8,8], index: 3, kind: input, shape index: {}]   ;;  %s5116_s4 = inlined_call_operand.vmem [shape: f32[2,16,16], index: 4, kind: input, shape index: {}]   ;;  %s5117_s5 = inlined_call_operand.vmem [shape: f32[2,16,16], index: 5, kind: input, shape index: {}]   ;;  %s5118_s6 = inlined_call_operand.vmem [shape: f32[2,16,16], index: 6, kind: input, shape index: {}]   ;;  %s5119_s7 = inlined_call_operand.vmem [shape: f32[2,16,16], index: 7, kind: input, shape index: {}]   ;;  %s5120_s8 = inlined_call_operand.vmem [shape: f32[2,16,16], index: 8, kind: input, shape index: {}]   ;;  %s5121_s9 = inlined_call_operand.vmem [shape: f32[2,16,16], index: 9, kind: input, shape index: {}]   ;;  %s5122_s10 = inlined_call_operand.vmem [shape: f32[16,32], index: 10, kind: input, shape index: {}]   ;;  %s5123_s11 = inlined_call_operand.vmem [shape: f32[1,32], index: 11, kind: input, shape index: {}]   ;;  %s5124_s12 = inlined_call_operand.vmem [shape: f32[4,32,8], index: 12, kind: input, shape index: {}]   ;;  %s5125_s13 = inlined_call_operand.vmem [shape: f32[4,32,8], index: 13, kind: input, shape index: {}]   ;;  %s5126_s14 = inlined_call_operand.vmem [shape: f32[4,32,8], index: 14, kind: input, shape index: {}]   ;;  %s5127_s15 = inlined_call_operand.vmem [shape: f32[32,64], index: 15, kind: input, shape index: {}]   ;;  %s5128_s16 = inlined_call_operand.vmem [shape: f32[64,32], index: 16, kind: input, shape index: {}]   ;;  %s5129_s17 = inlined_call_operand.hbm [shape: f32[2,8,32], index: 17, kind: output, shape index: {0}]   ;;  %s5130_s18 = inlined_call_operand.hbm [shape: f32[2,8,32], index: 18, kind: output, shape index: {1}]  }
   0x1   :  { %5137 = sst [smem:[#allocation12_spill]] %s5112_s0 }
   0x2   :  { %5138 = sst [smem:[#allocation13_spill]] %s5113_s1 }
   0x3   :  { %5139 = sst [smem:[#allocation14_spill]] %s5114_s2 }
   0x4   :  { %5140 = sst [smem:[#allocation15_spill]] %s5115_s3 }
   0x5   :  { %5141 = sst [smem:[#allocation16_spill]] %s5116_s4 }
   0x6   :  { %24 = vsyncpa [#allocation3], 0 }
   0x7   :  { %26 = vsyncpa [#allocation3 + $0x1], 0 }
   0x8   :  { %27 = vsyncpa [#allocation5], 0 }
   0x9   :  { %29 = vsyncpa [#allocation5 + $0x1], 0  ;;  %s4549_s27 = smov 0   ;;  %s4551_s28 = smov 0  }
   0xa   :  { %s4553_s29 = smov 0   ;;  %s4555_s30 = smov 0  }
   0xb LB: > { %5142 = sst [smem:[#allocation8_spill]] %s4440_s29  ;;  %s4570_s0 = sadd.s32 4294967295, %s4444_s30   ;;  %s4444_s30 = sphi %s4555_s30, %s5156_s30   ;;  %s4440_s29 = sphi %s4553_s29, %s5158_s29   ;;  %s4436_s28 = sphi %s4551_s28, %s5160_s28   ;;  %s4432_s27 = sphi %s4549_s27, %s5159_s27  }
   0xc   : > { %s3693_s19 = sadd.s32 4294967294, %s4444_s30   ;;  %s4574_s1 = sadd.s32 1, %s4444_s30  }
   0xd   : > { %5143 = sst [smem:[#allocation9_spill]] %s4574_s1  ;;  %s449_s20 = sadd.s32 1, %s4440_s29 }
   0xe   : > { %s446_s21 = ssub.s32 %s4444_s30, %s4574_s1  ;;  %p459_p0 = scmp.ne.s32.totalorder %s4440_s29, %s4436_s28 }
   0xf   : > { %p447_p1 = scmp.eq.s32.totalorder %s446_s21, 0  ;;  %p460_p2 = scmp.eq.s32.totalorder %s4570_s0, 1 }
  0x10   : > { %p465_p3 = scmp.ne.s32.totalorder %s4436_s28, %s4432_s27  ;;  %p466_p4 = scmp.eq.s32.totalorder %s3693_s19, 1 }
  0x11   : > { %s4585_s22 = scalar_select %p447_p1, %s4440_s29, %s449_s20  }
  0x12   : > { %p4587_p5 = por %p460_p2, %p459_p0  ;;  %p4591_p6 = por %p466_p4, %p465_p3 }
  0x13   : > { %5144 = sst [smem:[#allocation10_spill]] %s4585_s22  ;;  %p3696_p7 = scmp.ge.s32.totalorder %s4444_s30, 1 }
  0x14   : > { %s5146_s23 = scalar_select %p4591_p6, 1, 0 }
  0x15   : > { %p607_p8 = scmp.lt.s32.totalorder %s4444_s30, 3 }
  0x16   : > { %5147 = sst [smem:[#allocation11_spill]] %s5146_s23 }
  0x17   : > { %p608_p9 = pnand %p3696_p7, %p607_p8 }
  0x18   : > { %p707_p10 = scmp.lt.s32.totalorder (!%p608_p9), %s4570_s0, 1  ;;  %v4446_v0 = vmov (!%p608_p9), 0.0|0.0   ;;  %vm4447_vm0 = vmmov (!%p608_p9), 0   ;;  %v4448_v1 = vmov (!%p608_p9), 0.0   ;;  %s5148_s4 = sld [smem:[#allocation16_spill]] (!%p608_p9)  ;;  %vm759_vm1 = vcmask (!%p608_p9), 130048  }
  0x19   : > { %611 = sbr.rel (%p608_p9) target bundleno = 4678 (0x1246), region = 88  ;;  %4171 = vmatprep.subr.bf16.mxu0 (!%p608_p9), %v4446_v0  ;;  %3894 = vmatprep.mubr.msk.f32.mxu0 (!%p608_p9), %vm4447_vm0, %v4448_v1  ;;  %s5149_s1 = sld [smem:[#allocation12_spill]] (!%p608_p9)  ;;  %vm833_vm2 = vcmask (!%p608_p9), 64512   ;;  %v1652_v56 = vld [vmem:[%s5122_s10] sm:$0xff] (!%p608_p9)  ;;  %v1653_v57 = vld [vmem:[%s5122_s10 + $0x8] sm:$0xff] (!%p608_p9)  ;;  %v1738_v62 = vld [vmem:[%s5124_s12 + $0x10] sm:$0xff] (!%p608_p9) }
  0x1a   : > { %3897 = vmatprep.subr.mxu1 (!%p608_p9), %v4448_v1  ;;  %3899 = vmatprep.mubr.msk.f32.mxu1 (!%p608_p9), %vm4447_vm0, %v4448_v1  ;;  %s5150_s20 = sld [smem:[#allocation13_spill]] (!%p608_p9)  ;;  %s5151_s29 = sld [smem:[#allocation14_spill]] (!%p608_p9)  ;;  %v4190_v58 = vpack.c.bf16 (!%p608_p9), %v1653_v57, %v1652_v56  ;;  %v1736_v59 = vld [vmem:[%s5124_s12] sm:$0xff] (!%p608_p9)  ;;  %v1737_v60 = vld [vmem:[%s5124_s12 + $0x8] sm:$0xff] (!%p608_p9)  ;;  %v1739_v63 = vld [vmem:[%s5124_s12 + $0x18] sm:$0xff] (!%p608_p9)  ;;  %vm1734_vm3 = vcmask (!%p608_p9), 261120  }
  0x1b   : > { %s5152_s3 = sld [smem:[#allocation15_spill]] (!%p608_p9)  ;;  %v4193_v61 = vpack.c.bf16 (!%p608_p9), %v1737_v60, %v1736_v59  ;;  %v2332_v56 = vld [vmem:[%s5126_s14 + $0x8] sm:$0xff] (!%p608_p9)  ;;  %v2335_v57 = vld [vmem:[%s5126_s14 + $0x20] sm:$0xff] (!%p608_p9)  ;;  %vm3285_vm4 = vcmask (!%p608_p9), 195584   ;;  %vm3373_vm5 = vcmask (!%p608_p9), 523264  }
  0x20   : > { %s708_s24 = scalar_select %p707_p10, %s4570_s0, 1 }
  0x22   : > { %s4605_s25 = sshll.u32 %s708_s24, 4  ;;  %s4607_s26 = sshll.u32 %s708_s24, 3 }
  0x23   : > { %s727_s21 = scalar_lea.vmem %s5148_s4, %s4605_s25  ;;  %s710_s23 = scalar_lea.vmem %s5149_s1, %s4607_s26 }
  0x24   : > { %v755_v2 = vld [vmem:[%s727_s21] sm:$0xff]  ;;  %v756_v3 = vld [vmem:[%s727_s21 + $0x8] sm:$0xff]  ;;  %s714_s21 = scalar_lea.vmem %s5150_s20, %s4607_s26  ;;  %s732_s22 = scalar_lea.vmem %s5117_s5, %s4605_s25 }
  0x25   : > { %v4172_v4 = vpack.c.bf16 %v756_v3, %v755_v2  ;;  %v753_v5 = vld [vmem:[%s710_s23] sm:$0xff]  ;;  %v758_v10 = vld [vmem:[%s732_s22 + $0x8] sm:$0xff]  ;;  %s737_s19 = scalar_lea.vmem %s5118_s6, %s4605_s25  ;;  %s718_s1 = scalar_lea.vmem %s5151_s29, %s4607_s26  ;;  %v4196_v2 = vpack.c.bf16 %v1739_v63, %v1738_v62  ;;  %v2334_v62 = vld [vmem:[%s5126_s14 + $0x18] sm:$0xff] }
  0x26   : > { %v754_v6 = vld [vmem:[%s714_s21] sm:$0xff]  ;;  %v1055_v18 = vld [vmem:[%s737_s19 + $0x8] sm:$0xff]  ;;  %s742_s24 = scalar_lea.vmem %s5119_s7, %s4605_s25  ;;  %s747_s21 = scalar_lea.vmem %s5120_s8, %s4605_s25  ;;  %v2337_v63 = vld [vmem:[%s5126_s14 + $0x30] sm:$0xff] }
  0x27   : > { %4173 = vmatpush3.bf16.msra.mxu0 %v4172_v4  ;;  %v757_v9 = vld [vmem:[%s732_s22] sm:$0xff]  ;;  %v1057_v28 = vld [vmem:[%s742_s24 + $0x8] sm:$0xff]  ;;  %s722_s22 = scalar_lea.vmem %s5152_s3, %s4607_s26  ;;  %s4449_s3 = smov 8  }
  0x28   : > { %4174 = vmatprep.subr.bf16.mxu0 %v4446_v0  ;;  %v4175_v11 = vpack.c.bf16 %v758_v10, %v757_v9  ;;  %v1054_v17 = vld [vmem:[%s737_s19] sm:$0xff]  ;;  %v1352_v36 = vld [vmem:[%s747_s21 + $0x8] sm:$0xff]  ;;  %s752_s19 = scalar_lea.vmem %s5121_s9, %s4605_s25  ;;  %s4736_s25 = sand.u32 1, %s4436_s28  }
  0x29   : > { %v4178_v19 = vpack.c.bf16 %v1055_v18, %v1054_v17  ;;  %v1053_v24 = vld [vmem:[%s718_s1] sm:$0xff]  ;;  %v1354_v49 = vld [vmem:[%s752_s19 + $0x8] sm:$0xff]  ;;  %s4450_s20 = smov 16   ;;  %s5136_s4 = sshll.u32 %s4570_s0, 7 }
  0x2a   : > { %3895 = vmatmul.mubr.msk.f32.vlgmr.msra.gmra.mrb[0].mxu0 %vm759_vm1, %v753_v5  ;;  %v1056_v27 = vld [vmem:[%s742_s24] sm:$0xff]  ;;  %v1749_v18 = vld [vmem:[%s5124_s12 + $0x68] sm:$0xff]  ;;  %s4452_s1 = smov [#allocation2]  }
  0x2b   : > { %3906 = vmatprep.mubr.msk.f32.mxu0 %vm4447_vm0, %v4448_v1  ;;  %4176 = vmatpush3.bf16.msra.mxu0 %v4175_v11  ;;  %v4181_v29 = vpack.c.bf16 %v1057_v28, %v1056_v27  ;;  %v1351_v35 = vld [vmem:[%s747_s21] sm:$0xff]  ;;  %v1750_v27 = vld [vmem:[%s5124_s12 + $0x70] sm:$0xff]  ;;  %v1751_v28 = vld [vmem:[%s5124_s12 + $0x78] sm:$0xff]  ;;  %s4451_s21 = smov 24  }
  0x2c   : > { %3909 = vmatprep.subr.mxu0 %v4448_v1  ;;  %v4184_v37 = vpack.c.bf16 %v1352_v36, %v1351_v35  ;;  %v1350_v45 = vld [vmem:[%s722_s22] sm:$0xff]  ;;  %s4354_s22 = sshll.u32 %s4452_s1, 4  ;;  %s4355_s22 = int_to_ptr.vmem [resolvable:$false] %s4354_s22 }
  0x2d   : > { %v1353_v48 = vld [vmem:[%s752_s19] sm:$0xff]  ;;  %s5135_s19 = sshll.u32 %s4736_s25, 3 }
  0x2e   : > { %v4187_v50 = vpack.c.bf16 %v1354_v49, %v1353_v48  ;;  %v1748_v17 = vld [vmem:[%s5124_s12 + $0x60] sm:$0xff]  ;;  %s4774_s23 = scalar_lea.vmem [#allocation2], %s5135_s19  ;;  %v2045_v49 = vld [vmem:[%s5125_s13 + $0x50] sm:$0xff]  ;;  %s5040_s19 = scalar_lea.hbm %s5129_s17, %s5136_s4 }
  0xfd   : > { %v829_v7 = vpop.f32.mrb[0].mxu0 }
  0xfe   : > { %v3896_v8 = vpop.f32.mrb[1].mxu0  ;;  %3898 = vmatpush3.msra.mxu1 %v829_v7  ;;  %v1740_v7 = vld [vmem:[%s5124_s12 + $0x20] sm:$0xff] }
  0xff   : > { %3900 = vmatmul.mubr.msk.f32.vlgmr.msra.gmra.mrb[0].mxu1 %vm833_vm2, %v754_v6  ;;  %4177 = vmatprep.subr.bf16.mxu1 %v4446_v0  ;;  %v1741_v8 = vld [vmem:[%s5124_s12 + $0x28] sm:$0xff] }
 0x100   : > { %3918 = vmatprep.mubr.msk.f32.mxu1 %vm4447_vm0, %v4448_v1  ;;  %4179 = vmatpush3.bf16.msra.mxu1 %v4178_v19  ;;  %v4199_v10 = vpack.c.bf16 %v1741_v8, %v1740_v7  ;;  %v3727_v19 = vld [vmem:[%s5123_s11] ss:$0 sm:$0xff]  ;;  %v2344_v8 = vld [vmem:[%s5126_s14 + $0x68] sm:$0xff] }
 0x101   : > { %4180 = vmatprep.subr.bf16.mxu1 %v4446_v0  ;;  %v2343_v7 = vld [vmem:[%s5126_s14 + $0x60] sm:$0xff] }
 0x1d2   : > { %v903_v12 = vpop.f32.mrb[0].mxu1 }
 0x1d3   : > { %v907_v13 = vmax.f32 %v903_v12, 0.0  ;;  %v3901_v14 = vpop.f32.mrb[1].mxu1  ;;  %v1742_v12 = vld [vmem:[%s5124_s12 + $0x30] sm:$0xff] }
 0x1d5   : > { %3907 = vmatmul.mubr.msk.f32.vlgmr.msra.gmra.mrb[2].mxu0 %vm759_vm1, %v907_v13 }
 0x1d6   : > { %3911 = vmatprep.mubr.msk.f32.mxu0 %vm4447_vm0, %v4448_v1 }
 0x2a8   : > { %v977_v15 = vpop.f32.mrb[2].mxu0 }
 0x2a9   : > { %v3908_v16 = vpop.f32.mrb[3].mxu0  ;;  %3910 = vmatpush3.msra.mxu0 %v977_v15  ;;  %v1744_v15 = vld [vmem:[%s5124_s12 + $0x40] sm:$0xff] }
 0x2aa   : > { %3912 = vmatmul.mubr.msk.f32.vlgmr.msra.gmra.mrb[4].mxu0 %vm833_vm2, %v754_v6  ;;  %3921 = vmatprep.subr.mxu0 %v4448_v1  ;;  %v1745_v16 = vld [vmem:[%s5124_s12 + $0x48] sm:$0xff] }
 0x2ab   : > { %3923 = vmatprep.mubr.msk.f32.mxu0 %vm4447_vm0, %v4448_v1 }
 0x37d   : > { %v1047_v20 = vpop.f32.mrb[4].mxu0 }
 0x37e   : > { %v1051_v21 = vmax.f32 %v1047_v20, 0.0  ;;  %v3913_v22 = vpop.f32.mrb[5].mxu0 }
 0x37f   : > { %v4211_v22 = vpack.c.bf16 %v1749_v18, %v1748_v17 }
 0x380   : > { %v1052_v23 = vadd.f32 %v1051_v21, %v907_v13  ;;  %v1743_v13 = vld [vmem:[%s5124_s12 + $0x38] sm:$0xff]  ;;  %v4205_v21 = vpack.c.bf16 %v1745_v16, %v1744_v15 }
 0x381   : > { %v4202_v14 = vpack.c.bf16 %v1743_v13, %v1742_v12  ;;  %v2342_v12 = vld [vmem:[%s5126_s14 + $0x58] sm:$0xff]  ;;  %v2345_v13 = vld [vmem:[%s5126_s14 + $0x70] sm:$0xff] }
 0x382   : > { %3919 = vmatmul.mubr.msk.f32.vlgmr.msra.gmra.mrb[2].mxu1 %vm759_vm1, %v1052_v23  ;;  %v1647_v42 = vmul.f32 0.1, %v1052_v23  ;;  %v1746_v23 = vld [vmem:[%s5124_s12 + $0x50] sm:$0xff] }
 0x383   : > { %3930 = vmatprep.mubr.msk.f32.mxu1 %vm4447_vm0, %v4448_v1  ;;  %4182 = vmatpush3.bf16.msra.mxu1 %v4181_v29 }
 0x384   : > { %4183 = vmatprep.subr.bf16.mxu1 %v4446_v0 }
 0x455   : > { %v1127_v25 = vpop.f32.mrb[2].mxu1 }
 0x456   : > { %v3920_v26 = vpop.f32.mrb[3].mxu1  ;;  %3922 = vmatpush3.msra.mxu0 %v1127_v25 }
 0x457   : > { %3924 = vmatmul.mubr.msk.f32.vlgmr.msra.gmra.mrb[6].mxu0 %vm833_vm2, %v1053_v24  ;;  %3933 = vmatprep.subr.mxu0 %v4448_v1  ;;  %v1747_v26 = vld [vmem:[%s5124_s12 + $0x58] sm:$0xff] }
 0x458   : > { %3935 = vmatprep.mubr.msk.f32.mxu0 %vm4447_vm0, %v4448_v1  ;;  %v4208_v29 = vpack.c.bf16 %v1747_v26, %v1746_v23 }
 0x52a   : > { %v1200_v30 = vpop.f32.mrb[6].mxu0 }
 0x52b   : > { %v1204_v31 = vmax.f32 %v1200_v30, 0.0  ;;  %v3925_v32 = vpop.f32.mrb[7].mxu0  ;;  %v4214_v30 = vpack.c.bf16 %v1751_v28, %v1750_v27 }
 0x52c   : > { %v2036_v32 = vld [vmem:[%s5125_s13 + $0x8] sm:$0xff] }
 0x52d   : > { %3931 = vmatmul.mubr.msk.f32.vlgmr.msra.gmra.mrb[4].mxu1 %vm759_vm1, %v1204_v31 }
 0x52e   : > { %3942 = vmatprep.mubr.msk.f32.mxu1 %vm4447_vm0, %v4448_v1  ;;  %4185 = vmatpush3.bf16.msra.mxu1 %v4184_v37  ;;  %v2037_v37 = vld [vmem:[%s5125_s13 + $0x10] sm:$0xff] }
 0x52f   : > { %4186 = vmatprep.subr.bf16.mxu1 %v4446_v0 }
 0x600   : > { %v1274_v33 = vpop.f32.mrb[4].mxu1 }
 0x601   : > { %v3932_v34 = vpop.f32.mrb[5].mxu1  ;;  %3934 = vmatpush3.msra.mxu0 %v1274_v33  ;;  %v2039_v33 = vld [vmem:[%s5125_s13 + $0x20] sm:$0xff] }
 0x602   : > { %3936 = vmatmul.mubr.msk.f32.vlgmr.msra.gmra.mrb[8].mxu0 %vm833_vm2, %v1053_v24  ;;  %3945 = vmatprep.subr.mxu0 %v4448_v1  ;;  %v2040_v34 = vld [vmem:[%s5125_s13 + $0x28] sm:$0xff] }
 0x603   : > { %3947 = vmatprep.mubr.msk.f32.mxu0 %vm4447_vm0, %v4448_v1  ;;  %v4223_v36 = vpack.c.bf16 %v2040_v34, %v2039_v33 }
 0x6d5   : > { %v1344_v38 = vpop.f32.mrb[8].mxu0 }
 0x6d6   : > { %v1348_v39 = vmax.f32 %v1344_v38, 0.0  ;;  %v3937_v40 = vpop.f32.mrb[9].mxu0  ;;  %v2038_v38 = vld [vmem:[%s5125_s13 + $0x18] sm:$0xff] }
 0x6d7   : > { %v2042_v40 = vld [vmem:[%s5125_s13 + $0x38] sm:$0xff] }
 0x6d8   : > { %v1349_v41 = vadd.f32 %v1348_v39, %v1204_v31  ;;  %v2035_v31 = vld [vmem:[%s5125_s13] sm:$0xff]  ;;  %v2041_v39 = vld [vmem:[%s5125_s13 + $0x30] sm:$0xff] }
 0x6d9   : > { %v4217_v35 = vpack.c.bf16 %v2036_v32, %v2035_v31 }
 0x6da   : > { %v1648_v43 = vmul.f32 0.2, %v1349_v41  ;;  %3943 = vmatmul.mubr.msk.f32.vlgmr.msra.gmra.mrb[6].mxu1 %vm759_vm1, %v1349_v41  ;;  %v4220_v41 = vpack.c.bf16 %v2038_v38, %v2037_v37 }
 0x6db   : > { %3954 = vmatprep.mubr.msk.f32.mxu1 %vm4447_vm0, %v4448_v1  ;;  %4188 = vmatpush3.bf16.msra.mxu1 %v4187_v50  ;;  %v2046_v50 = vld [vmem:[%s5125_s13 + $0x58] sm:$0xff] }
 0x6dc   : > { %v1649_v44 = vadd.f32 %v1648_v43, %v1647_v42  ;;  %4189 = vmatprep.subr.bf16.mxu1 %v4446_v0  ;;  %v4226_v42 = vpack.c.bf16 %v2042_v40, %v2041_v39  ;;  %v2043_v43 = vld [vmem:[%s5125_s13 + $0x40] sm:$0xff] }
 0x7ad   : > { %v1424_v46 = vpop.f32.mrb[6].mxu1 }
 0x7ae   : > { %v3944_v47 = vpop.f32.mrb[7].mxu1  ;;  %3946 = vmatpush3.msra.mxu0 %v1424_v46  ;;  %v2048_v46 = vld [vmem:[%s5125_s13 + $0x68] sm:$0xff] }
 0x7af   : > { %3948 = vmatmul.mubr.msk.f32.vlgmr.msra.gmra.mrb[10].mxu0 %vm833_vm2, %v1350_v45  ;;  %3957 = vmatprep.subr.mxu0 %v4448_v1 }
 0x7b0   : > { %3959 = vmatprep.mubr.msk.f32.mxu0 %vm4447_vm0, %v4448_v1 }
 0x882   : > { %v1497_v51 = vpop.f32.mrb[10].mxu0 }
 0x883   : > { %v1501_v52 = vmax.f32 %v1497_v51, 0.0  ;;  %v3949_v53 = vpop.f32.mrb[11].mxu0  ;;  %v2049_v51 = vld [vmem:[%s5125_s13 + $0x70] sm:$0xff] }
 0x884   : > { %v4232_v53 = vpack.c.bf16 %v2046_v50, %v2045_v49 }
 0x885   : > { %3955 = vmatmul.mubr.msk.f32.vlgmr.msra.gmra.mrb[8].mxu1 %vm759_vm1, %v1501_v52 }
 0x886   : > { %3966 = vmatprep.mubr.msk.f32.mxu1 %vm4447_vm0, %v4448_v1  ;;  %4191 = vmatpush3.bf16.msra.mxu1 %v4190_v58  ;;  %v2336_v58 = vld [vmem:[%s5126_s14 + $0x28] sm:$0xff] }
 0x887   : > { %4198 = vmatprep.subr.bf16.mxu1 %v4446_v0  ;;  %v4247_v60 = vpack.c.bf16 %v2336_v58, %v2335_v57 }
 0x958   : > { %v1571_v54 = vpop.f32.mrb[8].mxu1 }
 0x959   : > { %v3956_v55 = vpop.f32.mrb[9].mxu1  ;;  %3958 = vmatpush3.msra.mxu0 %v1571_v54 }
 0x95a   : > { %3960 = vmatmul.mubr.msk.f32.vlgmr.msra.gmra.mrb[12].mxu0 %vm833_vm2, %v1350_v45  ;;  %4192 = vmatprep.subr.bf16.mxu0 %v4446_v0  ;;  %v2047_v45 = vld [vmem:[%s5125_s13 + $0x60] sm:$0xff] }
 0x95b   : > { %3977 = vmatprep.mubr.msk.f32.mxu0 %vm4447_vm0, %v4448_v1  ;;  %4194 = vmatpush3.bf16.msra.mxu0 %v4193_v61  ;;  %v4235_v48 = vpack.c.bf16 %v2048_v46, %v2047_v45  ;;  %v2331_v55 = vld [vmem:[%s5126_s14] sm:$0xff]  ;;  %v2333_v61 = vld [vmem:[%s5126_s14 + $0x10] sm:$0xff] }
 0x95c   : > { %4195 = vmatprep.subr.bf16.mxu0 %v4446_v0  ;;  %v4241_v59 = vpack.c.bf16 %v2332_v56, %v2331_v55 }
 0x95f   : > { %4197 = vmatpush3.bf16.msra.mxu0 %v4196_v2  ;;  %v2338_v2 = vld [vmem:[%s5126_s14 + $0x38] sm:$0xff] }
 0x960   : > { %4204 = vmatprep.subr.bf16.mxu0 %v4446_v0 }
 0xa2d   : > { %v1641_v3 = vpop.f32.mrb[12].mxu0 }
 0xa2e   : > { %v1645_v4 = vmax.f32 %v1641_v3, 0.0  ;;  %v3961_v5 = vpop.f32.mrb[13].mxu0  ;;  %v4244_v3 = vpack.c.bf16 %v2334_v62, %v2333_v61 }
 0xa2f   : > { %v2339_v5 = vld [vmem:[%s5126_s14 + $0x40] sm:$0xff] }
 0xa30   : > { %v1646_v6 = vadd.f32 %v1645_v4, %v1501_v52  ;;  %v2050_v52 = vld [vmem:[%s5125_s13 + $0x78] sm:$0xff]  ;;  %v4250_v4 = vpack.c.bf16 %v2338_v2, %v2337_v63 }
 0xa31   : > { %v4238_v54 = vpack.c.bf16 %v2050_v52, %v2049_v51 }
 0xa32   : > { %v1650_v9 = vmul.f32 0.7, %v1646_v6  ;;  %v2340_v6 = vld [vmem:[%s5126_s14 + $0x48] sm:$0xff] }
 0xa34   : > { %v1651_v11 = vadd.f32 %v1650_v9, %v1649_v44  ;;  %v2044_v44 = vld [vmem:[%s5125_s13 + $0x48] sm:$0xff]  ;;  %v4253_v9 = vpack.c.bf16 %v2340_v6, %v2339_v5 }
 0xa35   : > { %v4229_v47 = vpack.c.bf16 %v2044_v44, %v2043_v43 }
 0xa36   : > { %3967 = vmatmul.mubr.msk.f32.vlgmr.msra.gmra.mrb[10].mxu1 %vm759_vm1, %v1651_v11  ;;  %v2341_v11 = vld [vmem:[%s5126_s14 + $0x50] sm:$0xff] }
 0xa37   : > { %4200 = vmatpush3.bf16.msra.mxu1 %v4199_v10  ;;  %3988 = vmatprep.mubr.msk.f32.mxu1 %vm4447_vm0, %v4448_v1  ;;  %v4259_v10 = vpack.c.bf16 %v2344_v8, %v2343_v7  ;;  %v4256_v15 = vpack.c.bf16 %v2342_v12, %v2341_v11 }
 0xa38   : > { %4201 = vmatprep.subr.bf16.mxu1 %v4446_v0 }
 0xa3b   : > { %4203 = vmatpush3.bf16.msra.mxu1 %v4202_v14  ;;  %v2346_v14 = vld [vmem:[%s5126_s14 + $0x78] sm:$0xff] }
 0xa3c   : > { %4210 = vmatprep.subr.bf16.mxu1 %v4446_v0  ;;  %v4262_v16 = vpack.c.bf16 %v2346_v14, %v2345_v13 }
 0xb09   : > { %v1730_v20 = vpop.f32.mrb[10].mxu1 }
 0xb0a   : > { %v4757_v24 = vadd.f32 %v3727_v19, %v1730_v20  ;;  %v3968_v25 = vpop.f32.mrb[11].mxu1 }
 0xb0c   : > { %3978 = vmatmul.mubr.msk.f32.vlgmr.msra.gmra.mrb[14].mxu0 %vm1734_vm3, %v4757_v24  ;;  %3989 = vmatmul.mubr.msk.f32.vlgmr.msra.gmra.mrb[12].mxu1 %vm1734_vm3, %v4757_v24  ;;  %1735 = vst.msk [vmem:[%s4774_s23] sm:$0xff] %vm1734_vm3, %v4757_v24 }
 0xb0d   : > { %4206 = vmatpush3.bf16.msra.mxu0 %v4205_v21  ;;  %4212 = vmatpush3.bf16.msra.mxu1 %v4211_v22 }
 0xb0e   : > { %4207 = vmatprep.subr.bf16.mxu0 %v4446_v0  ;;  %4213 = vmatprep.subr.bf16.mxu1 %v4446_v0 }
 0xb0f   : > { %3999 = vmatprep.mubr.msk.f32.mxu0 %vm4447_vm0, %v4448_v1  ;;  %4010 = vmatprep.mubr.msk.f32.mxu1 %vm4447_vm0, %v4448_v1 }
 0xb11   : > { %4209 = vmatpush3.bf16.msra.mxu0 %v4208_v29  ;;  %4215 = vmatpush3.bf16.msra.mxu1 %v4214_v30 }
 0xb12   : > { %4216 = vmatprep.subr.bf16.mxu0 %v4446_v0  ;;  %4222 = vmatprep.subr.bf16.mxu1 %v4446_v0 }
 0xb14   : > { %4000 = vmatmul.mubr.msk.f32.vlgmr.msra.gmra.mrb[16].mxu0 %vm1734_vm3, %v4757_v24  ;;  %4011 = vmatmul.mubr.msk.f32.vlgmr.msra.gmra.mrb[14].mxu1 %vm1734_vm3, %v4757_v24 }
 0xb15   : > { %4218 = vmatpush3.bf16.msra.mxu0 %v4217_v35  ;;  %4224 = vmatpush3.bf16.msra.mxu1 %v4223_v36 }
 0xb16   : > { %4219 = vmatprep.subr.bf16.mxu0 %v4446_v0  ;;  %4225 = vmatprep.subr.bf16.mxu1 %v4446_v0 }
 0xb17   : > { %4021 = vmatprep.mubr.msk.f32.mxu0 %vm4447_vm0, %v4448_v1  ;;  %4032 = vmatprep.mubr.msk.f32.mxu1 %vm4447_vm0, %v4448_v1 }
 0xb19   : > { %4221 = vmatpush3.bf16.msra.mxu0 %v4220_v41  ;;  %4227 = vmatpush3.bf16.msra.mxu1 %v4226_v42 }
 0xb1a   : > { %4228 = vmatprep.subr.bf16.mxu0 %v4446_v0  ;;  %4234 = vmatprep.subr.bf16.mxu1 %v4446_v0 }
 0xb1c   : > { %4022 = vmatmul.mubr.msk.f32.vlgmr.msra.gmra.mrb[18].mxu0 %vm1734_vm3, %v4757_v24  ;;  %4033 = vmatmul.mubr.msk.f32.vlgmr.msra.gmra.mrb[16].mxu1 %vm1734_vm3, %v4757_v24 }
 0xb1d   : > { %4230 = vmatpush3.bf16.msra.mxu0 %v4229_v47  ;;  %4236 = vmatpush3.bf16.msra.mxu1 %v4235_v48 }
 0xb1e   : > { %4231 = vmatprep.subr.bf16.mxu0 %v4446_v0  ;;  %4237 = vmatprep.subr.bf16.mxu1 %v4446_v0 }
 0xb1f   : > { %4043 = vmatprep.mubr.msk.f32.mxu0 %vm4447_vm0, %v4448_v1  ;;  %4054 = vmatprep.mubr.msk.f32.mxu1 %vm4447_vm0, %v4448_v1 }
 0xb21   : > { %4233 = vmatpush3.bf16.msra.mxu0 %v4232_v53  ;;  %4239 = vmatpush3.bf16.msra.mxu1 %v4238_v54 }
 0xb22   : > { %4240 = vmatprep.subr.bf16.mxu0 %v4446_v0  ;;  %4246 = vmatprep.subr.bf16.mxu1 %v4446_v0 }
 0xb24   : > { %4044 = vmatmul.mubr.msk.f32.vlgmr.msra.gmra.mrb[20].mxu0 %vm1734_vm3, %v4757_v24  ;;  %4055 = vmatmul.mubr.msk.f32.vlgmr.msra.gmra.mrb[18].mxu1 %vm1734_vm3, %v4757_v24 }
 0xb25   : > { %4242 = vmatpush3.bf16.msra.mxu0 %v4241_v59  ;;  %4248 = vmatpush3.bf16.msra.mxu1 %v4247_v60 }
 0xb26   : > { %4243 = vmatprep.subr.bf16.mxu0 %v4446_v0  ;;  %4249 = vmatprep.subr.bf16.mxu1 %v4446_v0 }
 0xb27   : > { %4065 = vmatprep.mubr.msk.f32.mxu0 %vm4447_vm0, %v4448_v1  ;;  %4076 = vmatprep.mubr.msk.f32.mxu1 %vm4447_vm0, %v4448_v1 }
 0xb29   : > { %4245 = vmatpush3.bf16.msra.mxu0 %v4244_v3  ;;  %4251 = vmatpush3.bf16.msra.mxu1 %v4250_v4 }
 0xb2a   : > { %4252 = vmatprep.subr.bf16.mxu0 %v4446_v0  ;;  %4258 = vmatprep.subr.bf16.mxu1 %v4446_v0 }
 0xb2c   : > { %4066 = vmatmul.mubr.msk.f32.vlgmr.msra.gmra.mrb[22].mxu0 %vm1734_vm3, %v4757_v24  ;;  %4077 = vmatmul.mubr.msk.f32.vlgmr.msra.gmra.mrb[20].mxu1 %vm1734_vm3, %v4757_v24 }
 0xb2d   : > { %4254 = vmatpush3.bf16.msra.mxu0 %v4253_v9  ;;  %4260 = vmatpush3.bf16.msra.mxu1 %v4259_v10 }
 0xb2e   : > { %4255 = vmatprep.subr.bf16.mxu0 %v4446_v0  ;;  %4261 = vmatprep.subr.bf16.mxu1 %v4446_v0 }
 0xb2f   : > { %4087 = vmatprep.mubr.msk.f32.mxu0 %vm4447_vm0, %v4448_v1  ;;  %4098 = vmatprep.mubr.msk.f32.mxu1 %vm4447_vm0, %v4448_v1 }
 0xb31   : > { %4257 = vmatpush3.bf16.msra.mxu0 %v4256_v15  ;;  %4263 = vmatpush3.bf16.msra.mxu1 %v4262_v16 }
 0xb32   : > { %4101 = vmatprep.subr.mxu0 %v4448_v1  ;;  %4106 = vmatprep.subr.mxu1 %v4448_v1 }
 0xb34   : > { %4088 = vmatmul.mubr.msk.f32.vlgmr.msra.gmra.mrb[24].mxu0 %vm1734_vm3, %v4757_v24  ;;  %4099 = vmatmul.mubr.msk.f32.vlgmr.msra.gmra.mrb[22].mxu1 %vm1734_vm3, %v4757_v24 }
 0xb35   : > { %4103 = vmatprep.mubr.msk.f32.mxu0 %vm4447_vm0, %v4448_v1  ;;  %4108 = vmatprep.mubr.msk.f32.mxu1 %vm4447_vm0, %v4448_v1 }
 0xbdf   : > { %v1821_v17 = vpop.f32.mrb[14].mxu0  ;;  %v1891_v18 = vpop.f32.mrb[12].mxu1 }
 0xbe0   : > { %v3979_v19 = vpop.f32.mrb[15].mxu0  ;;  %v3990_v20 = vpop.f32.mrb[13].mxu1 }
 0xbe7   : > { %v1961_v21 = vpop.f32.mrb[16].mxu0  ;;  %v2031_v22 = vpop.f32.mrb[14].mxu1 }
 0xbe8   : > { %v4001_v23 = vpop.f32.mrb[17].mxu0  ;;  %v4012_v25 = vpop.f32.mrb[15].mxu1 }
 0xbef   : > { %v2117_v26 = vpop.f32.mrb[18].mxu0  ;;  %v2187_v27 = vpop.f32.mrb[16].mxu1 }
 0xbf0   : > { %v4023_v28 = vpop.f32.mrb[19].mxu0  ;;  %v4034_v29 = vpop.f32.mrb[17].mxu1  ;;  %4102 = vmatpush3.xpose.msk.msra.mxu0 %vm833_vm2, %v2117_v26  ;;  %4107 = vmatpush3.xpose.msk.msra.mxu1 %vm833_vm2, %v2187_v27 }
 0xbf1   : > { %4111 = vmatprep.subr.mxu0 %v4448_v1  ;;  %4116 = vmatprep.subr.mxu1 %v4448_v1  ;;  %v3287_v28 = vld [vmem:[%s5127_s15] sm:$0xff]  ;;  %v3288_v29 = vld [vmem:[%s5127_s15 + $0x8] sm:$0xff] }
 0xbf3   : > { %4104 = vmatmul.mubr.msk.f32.vlgmr.msra.gmra.mrb[26].mxu0 %vm833_vm2, %v1821_v17  ;;  %4109 = vmatmul.mubr.msk.f32.vlgmr.msra.gmra.mrb[24].mxu1 %vm833_vm2, %v1891_v18 }
 0xbf4   : > { %4113 = vmatprep.mubr.msk.f32.mxu0 %vm4447_vm0, %v4448_v1  ;;  %4118 = vmatprep.mubr.msk.f32.mxu1 %vm4447_vm0, %v4448_v1 }
 0xbf7   : > { %v2257_v24 = vpop.f32.mrb[20].mxu0  ;;  %v2327_v30 = vpop.f32.mrb[18].mxu1 }
 0xbf8   : > { %v4045_v31 = vpop.f32.mrb[21].mxu0  ;;  %v4056_v32 = vpop.f32.mrb[19].mxu1  ;;  %4112 = vmatpush3.xpose.msk.msra.mxu0 %vm833_vm2, %v2257_v24  ;;  %4117 = vmatpush3.xpose.msk.msra.mxu1 %vm833_vm2, %v2327_v30  ;;  %v4265_v24 = vpack.c.bf16 %v3288_v29, %v3287_v28  ;;  %v3289_v30 = vld [vmem:[%s5127_s15 + $0x10] sm:$0xff] }
 0xbf9   : > { %4121 = vmatprep.subr.mxu0 %v4448_v1  ;;  %4126 = vmatprep.subr.mxu1 %v4448_v1 }
 0xbfb   : > { %4114 = vmatmul.mubr.msk.f32.vlgmr.msra.gmra.mrb[28].mxu0 %vm833_vm2, %v1961_v21  ;;  %4119 = vmatmul.mubr.msk.f32.vlgmr.msra.gmra.mrb[26].mxu1 %vm833_vm2, %v2031_v22 }
 0xbfc   : > { %4123 = vmatprep.mubr.msk.f32.mxu0 %vm4447_vm0, %v4448_v1  ;;  %4128 = vmatprep.mubr.msk.f32.mxu1 %vm4447_vm0, %v4448_v1 }
 0xbff   : > { %v2413_v33 = vpop.f32.mrb[22].mxu0  ;;  %v2483_v34 = vpop.f32.mrb[20].mxu1 }
 0xc00   : > { %v4067_v35 = vpop.f32.mrb[23].mxu0  ;;  %v4078_v36 = vpop.f32.mrb[21].mxu1  ;;  %4122 = vmatpush3.msra.mxu0 %v2413_v33  ;;  %4127 = vmatpush3.msra.mxu1 %v2483_v34  ;;  %v3365_v34 = vld [vmem:[%s5128_s16] sm:$0xff] }
 0xc01   : > { %4131 = vmatprep.subr.mxu0 %v4448_v1  ;;  %4136 = vmatprep.subr.mxu1 %v4448_v1  ;;  %v3366_v35 = vld [vmem:[%s5128_s16 + $0x8] sm:$0xff]  ;;  %v3367_v36 = vld [vmem:[%s5128_s16 + $0x10] sm:$0xff] }
 0xc07   : > { %v4961_v37 = vpop.f32.mrb[24].mxu0  ;;  %v4963_v38 = vpop.f32.mrb[22].mxu1 }
 0xc08   : > { %v4089_v39 = vpop.f32.mrb[25].mxu0  ;;  %v4100_v40 = vpop.f32.mrb[23].mxu1 }
 0xcc6   : > { %v2699_v41 = vpop.f32.mrb[26].mxu0  ;;  %v2775_v42 = vpop.f32.mrb[24].mxu1 }
 0xcc7   : > { %v2931_v43 = vmul.f32 0.35355338, %v2699_v41  ;;  %v4105_v44 = vpop.f32.mrb[27].mxu0  ;;  %v4110_v45 = vpop.f32.mrb[25].mxu1  ;;  %v2932_v46 = vmul.f32 0.35355338, %v2775_v42 }
 0xcc8   : > { %v3369_v42 = vld [vmem:[%s5128_s16 + $0x20] sm:$0xff] }
 0xcc9   : > { %v2935_v47 = vsel %vm833_vm2, %v2931_v43, -inf  ;;  %v2938_v48 = vsel %vm833_vm2, %v2932_v46, -inf }
 0xcca   : > { %2936 = vmax.xlane.f32.xlu0 %v2935_v47 }
 0xcce   : > { %v2927_v49 = vpop.f32.mrb[26].mxu1  ;;  %2939 = vmax.xlane.f32.xlu0 %v2938_v48  ;;  %v2851_v50 = vpop.f32.mrb[28].mxu0 }
 0xccf   : > { %v2933_v51 = vmul.f32 0.35355338, %v2851_v50  ;;  %v4115_v52 = vpop.f32.mrb[29].mxu0  ;;  %v4120_v53 = vpop.f32.mrb[27].mxu1  ;;  %v2934_v54 = vmul.f32 0.35355338, %v2927_v49 }
 0xcd1   : > { %v2941_v55 = vsel %vm833_vm2, %v2933_v51, -inf  ;;  %v2944_v56 = vsel %vm833_vm2, %v2934_v54, -inf }
 0xcd2   : > { %2942 = vmax.xlane.f32.xlu1 %v2941_v55  ;;  %v3371_v55 = vld [vmem:[%s5128_s16 + $0x30] sm:$0xff] }
 0xcd6   : > { %2945 = vmax.xlane.f32.xlu1 %v2944_v56  ;;  %v3372_v56 = vld [vmem:[%s5128_s16 + $0x38] sm:$0xff] }
 0xd57   : > { %v2937_v57 = vpop.xlane.xlu0 %2936 }
 0xd58   : > { %v2947_v58 = vsub.f32 %v2931_v43, %v2937_v57  ;;  %v3370_v43 = vld [vmem:[%s5128_s16 + $0x28] sm:$0xff] }
 0xd59   : > { %v4277_v45 = vpack.c.bf16 %v3370_v43, %v3369_v42 }
 0xd5a   : > { %v2951_v59 = vmul.f32 1.442695, %v2947_v58 }
 0xd5b   : > { %v2940_v60 = vpop.xlane.xlu0 %2939 }
 0xd5c   : > { %4332 = vpow2.f32 %v2951_v59  ;;  %v2948_v61 = vsub.f32 %v2932_v46, %v2940_v60 }
 0xd5e   : > { %v2953_v62 = vmul.f32 1.442695, %v2948_v61 }
 0xd5f   : > { %v2943_v63 = vpop.xlane.xlu1 %2942 }
 0xd60   : > { %4334 = vpow2.f32 %v2953_v62  ;;  %v2949_v2 = vsub.f32 %v2933_v51, %v2943_v63 }
 0xd62   : > { %v2955_v3 = vmul.f32 1.442695, %v2949_v2 }
 0xd63   : > { %v2946_v4 = vpop.xlane.xlu1 %2945 }
 0xd64   : > { %4336 = vpow2.f32 %v2955_v3  ;;  %v2950_v5 = vsub.f32 %v2934_v54, %v2946_v4 }
 0xd66   : > { %v4333_v6 = vpop.eup %4332  ;;  %v2957_v7 = vmul.f32 1.442695, %v2950_v5 }
 0xd67   : > { %v2959_v8 = vsel %vm833_vm2, %v4333_v6, 0.0 }
 0xd68   : > { %4338 = vpow2.f32 %v2957_v7  ;;  %2960 = vadd.xlane.f32.xlu0 %v2959_v8 }
 0xd6a   : > { %v4335_v9 = vpop.eup %4334 }
 0xd6b   : > { %v2962_v10 = vsel %vm833_vm2, %v4335_v9, 0.0 }
 0xd6c   : > { %2963 = vadd.xlane.f32.xlu1 %v2962_v10 }
 0xd6e   : > { %v4337_v11 = vpop.eup %4336 }
 0xd6f   : > { %v2965_v12 = vsel %vm833_vm2, %v4337_v11, 0.0 }
 0xd70   : > { %2966 = vadd.xlane.f32.xlu0 %v2965_v12 }
 0xd72   : > { %v4339_v13 = vpop.eup %4338 }
 0xd73   : > { %v2968_v14 = vsel %vm833_vm2, %v4339_v13, 0.0 }
 0xd74   : > { %2969 = vadd.xlane.f32.xlu1 %v2968_v14 }
 0xdf5   : > { %v2961_v15 = vpop.xlane.xlu0 %2960 }
 0xdf6   : > { %4340 = vrcp.f32 %v2961_v15 }
 0xdf9   : > { %v2964_v16 = vpop.xlane.xlu1 %2963 }
 0xdfa   : > { %4342 = vrcp.f32 %v2964_v16 }
 0xdfd   : > { %v2967_v17 = vpop.xlane.xlu0 %2966 }
 0xdfe   : > { %4344 = vrcp.f32 %v2967_v17 }
 0xe00   : > { %v4341_v18 = vpop.eup %4340 }
 0xe01   : > { %v2972_v19 = vmul.f32 %v4341_v18, %v4333_v6  ;;  %v2970_v20 = vpop.xlane.xlu1 %2969 }
 0xe02   : > { %4346 = vrcp.f32 %v2970_v20 }
 0xe03   : > { %4124 = vmatmul.mubr.msk.f32.vlgmr.msra.gmra.mrb[30].mxu0 %vm833_vm2, %v2972_v19 }
 0xe04   : > { %v4343_v21 = vpop.eup %4342  ;;  %4132 = vmatpush3.msra.mxu0 %v4961_v37  ;;  %4133 = vmatprep.mubr.msk.f32.mxu0 %vm4447_vm0, %v4448_v1  ;;  %v4271_v37 = vpack.c.bf16 %v3366_v35, %v3365_v34 }
 0xe05   : > { %v2974_v22 = vmul.f32 %v4343_v21, %v4335_v9  ;;  %4264 = vmatprep.subr.bf16.mxu0 %v4446_v0 }
 0xe07   : > { %4129 = vmatmul.mubr.msk.f32.vlgmr.msra.gmra.mrb[28].mxu1 %vm833_vm2, %v2974_v22 }
 0xe08   : > { %v4345_v23 = vpop.eup %4344  ;;  %4137 = vmatpush3.msra.mxu1 %v4963_v38  ;;  %4138 = vmatprep.mubr.msk.f32.mxu1 %vm4447_vm0, %v4448_v1  ;;  %v3368_v38 = vld [vmem:[%s5128_s16 + $0x18] sm:$0xff] }
 0xe09   : > { %v2976_v25 = vmul.f32 %v4345_v23, %v4337_v11  ;;  %4270 = vmatprep.subr.bf16.mxu1 %v4446_v0  ;;  %v4274_v40 = vpack.c.bf16 %v3368_v38, %v3367_v36 }
 0xe0b   : > { %4134 = vmatmul.mubr.msk.f32.vlgmr.msra.gmra.mrb[32].mxu0 %vm833_vm2, %v2976_v25 }
 0xe0c   : > { %v4347_v26 = vpop.eup %4346  ;;  %4149 = vmatprep.mubr.msk.f32.mxu0 %vm4447_vm0, %v4448_v1  ;;  %4266 = vmatpush3.bf16.msra.mxu0 %v4265_v24 }
 0xe0d   : > { %v2978_v27 = vmul.f32 %v4347_v26, %v4339_v13  ;;  %4267 = vmatprep.subr.bf16.mxu0 %v4446_v0 }
 0xe0f   : > { %4139 = vmatmul.mubr.msk.f32.vlgmr.msra.gmra.mrb[30].mxu1 %vm833_vm2, %v2978_v27 }
 0xe10   : > { %4168 = vmatprep.mubr.msk.f32.mxu1 %vm4447_vm0, %v4448_v1  ;;  %v3290_v1 = vld [vmem:[%s5127_s15 + $0x18] sm:$0xff]  ;;  %4272 = vmatpush3.bf16.msra.mxu1 %v4271_v37 }
 0xe11   : > { %v4268_v31 = vpack.c.bf16 %v3290_v1, %v3289_v30  ;;  %4273 = vmatprep.subr.bf16.mxu1 %v4446_v0 }
 0xe13   : > { %4269 = vmatpush3.bf16.msra.mxu0 %v4268_v31 }
 0xe14   : > { %4275 = vmatpush3.bf16.msra.mxu1 %v4274_v40 }
 0xe15   : > { %4276 = vmatprep.subr.bf16.mxu1 %v4446_v0 }
 0xe18   : > { %4278 = vmatpush3.bf16.msra.mxu1 %v4277_v45 }
 0xe19   : > { %4279 = vmatprep.subr.bf16.mxu1 %v4446_v0  ;;  %v4280_v0 = vpack.c.bf16 %v3372_v56, %v3371_v55 }
 0xe1c   : > { %4281 = vmatpush3.bf16.msra.mxu1 %v4280_v0 }
 0xed6   : > { %v3048_v32 = vpop.f32.mrb[30].mxu0 }
 0xed7   : > { %v4125_v33 = vpop.f32.mrb[31].mxu0 }
 0xeda   : > { %v3121_v39 = vpop.f32.mrb[28].mxu1 }
 0xedb   : > { %3272 = vrot.lane.b32.xlu0 %v3121_v39, %s4449_s3  ;;  %v4130_v41 = vpop.f32.mrb[29].mxu1  ;;  %s4356_s3 = scalar_lea.vmem %s4355_s22, 256 }
 0xede   : > { %v3194_v44 = vpop.f32.mrb[32].mxu0 }
 0xedf   : > { %3276 = vrot.lane.b32.xlu1 %v3194_v44, %s4450_s20  ;;  %v4135_v46 = vpop.f32.mrb[33].mxu0  ;;  %s3481_s20 = sshll.u32 %s4774_s23, 4  ;;  %s3482_s20 = int_to_ptr.vmem [resolvable:$true] %s3481_s20 }
 0xee0   : > { %s4350_s29 = scalar_lea.vmem %s3482_s20, 128  ;;  %p4357_p0 = scmp.lt.s32.totalorder %s3482_s20, %s4355_s22 }
 0xee1   : > { %p4351_p11 = scmp.ne.s32.totalorder %s3482_s20, %s4350_s29  ;;  %p4358_p1 = scmp.lt.s32.totalorder %s4356_s3, %s4350_s29 }
 0xee2   : > { %v3267_v47 = vpop.f32.mrb[30].mxu1 }
 0xee3   : > { %v4140_v48 = vpop.f32.mrb[31].mxu1  ;;  %3280 = vrot.lane.b32.xlu1 %v3267_v47, %s4451_s21  ;;  %s3463_s21 = scalar_lea.sflag [#allocation3], %s4736_s25  ;;  %p4352_p12 = pnand %p4351_p11, %p4587_p5 }
 0xee4   : > { %p4359_p2 = por %p4358_p1, %p4357_p0 }
 0xee5   : > { %p4353_p13 = pneg %p4352_p12 }
 0xee7   : > { %p4360_p3 = pnand %p4359_p2, %p4353_p13 }
 0xf4d   : > { %v3273_v49 = vpop.permute.xlu0 %3272 }
 0xf4e   : > { %v3283_v51 = vsel %vm833_vm2, %v3048_v32, %v3273_v49 }
 0xf51   : > { %v3277_v50 = vpop.permute.xlu1 %3276 }
 0xf52   : > { %v3284_v52 = vsel %vm759_vm1, %v3283_v51, %v3277_v50 }
 0xf55   : > { %v3281_v53 = vpop.permute.xlu1 %3280 }
 0xf56   : > { %v3286_v54 = vsel %vm3285_vm4, %v3284_v52, %v3281_v53 }
 0xf57   : > { %4150 = vmatmul.mubr.msk.f32.vlgmr.msra.gmra.mrb[34].mxu0 %vm1734_vm3, %v3286_v54 }
0x102a   : > { %v3360_v57 = vpop.f32.mrb[34].mxu0 }
0x102b   : > { %v3364_v58 = vmax.f32 %v3360_v57, 0.0  ;;  %v4151_v59 = vpop.f32.mrb[35].mxu0 }
0x102d   : > { %4169 = vmatmul.mubr.msk.f32.vlgmr.msra.gmra.mrb[32].mxu1 %vm3373_vm5, %v3364_v58 }
0x1100   : > { %v3443_v60 = vpop.f32.mrb[32].mxu1 }
0x1101   : > { %v3444_v61 = vadd.f32 %v3443_v60, %v3286_v54  ;;  %v4170_v62 = vpop.f32.mrb[33].mxu1 }
0x1103   : > { %v3447_v63 = vsel %vm1734_vm3, %v3444_v61, 0.0 }
0x1104   : > { %3448 = vadd.xlane.f32.xlu1 %v3447_v63 }
0x1191   : > { %v3449_v2 = vpop.xlane.xlu1 %3448 }
0x1192   : > { %v3451_v3 = vmul.f32 0.03125, %v3449_v2 }
0x1194   : > { %v3452_v4 = vsub.f32 %v3444_v61, %v3451_v3 }
0x1196   : > { %v3453_v5 = vmul.f32 %v3452_v4, %v3452_v4 }
0x1198   : > { %v3454_v6 = vsel %vm1734_vm3, %v3453_v5, 0.0 }
0x1199   : > { %3455 = vadd.xlane.f32.xlu0 %v3454_v6 }
0x119a   : > { %4363 = shalt.err (!%p4360_p3)
}
0x119b   : > { %s4364_s23 = scalar_lea.hbm %s5040_s19, 128  ;;  %s4368_s1 = scalar_lea.hbm %s5129_s17, 256 }
0x119c   : > { %p4365_p4 = scmp.ne.s32.totalorder %s5040_s19, %s4364_s23  ;;  %p4369_p9 = scmp.lt.u32.totalorder %s5040_s19, %s5129_s17 }
0x119d   : > { %p4370_p10 = scmp.lt.u32.totalorder %s4368_s1, %s4364_s23  ;;  %p4372_p12 = scmp.lt.u32.totalorder %s4364_s23, %s5040_s19 }
0x119e   : > { %p4366_p7 = pnand %p4365_p4, %p4587_p5 }
0x119f   : > { %p4371_p11 = por %p4370_p10, %p4369_p9 }
0x11a0   : > { %p4367_p8 = pneg %p4366_p7 }
0x11a1   : > { %p4373_p13 = por %p4372_p12, %p4371_p11 }
0x11a3   : > { %p4374_p0 = pnand %p4373_p13, %p4367_p8 }
0x11a5   : > { %4377 = shalt.err (!%p4374_p0)
}
0x11a6   : > { %4282 = dma.vmem_to_hbm [thread:$0]  (%p4587_p5), %s3482_s20, 128, %s5040_s19, %s3463_s21  }
0x11a7   : > { %s5153_s4 = sshll.u32 %s4736_s25, 3  ;;  %s5154_s23 = sshll.u32 %s4570_s0, 7 }
0x11a8   : > { %s706_s29 = scalar_lea.vmem [#allocation4], %s5153_s4  ;;  %s5068_s1 = scalar_lea.hbm %s5130_s18, %s5154_s23 }
0x11a9   : > { %s3494_s3 = sshll.u32 %s706_s29, 4  ;;  %s3468_s19 = scalar_lea.sflag [#allocation5], %s4736_s25  ;;  %s5070_s3 = int_to_ptr.vmem [resolvable:$true] %s3494_s3 }
0x11aa   : > { %s4378_s20 = scalar_lea.vmem %s5070_s3, 128  ;;  %s4453_s21 = smov [#allocation4]  }
0x11ab   : > { %p4379_p1 = scmp.ne.s32.totalorder %s5070_s3, %s4378_s20  ;;  %s4382_s0 = sshll.u32 %s4453_s21, 4  ;;  %s4383_s0 = int_to_ptr.vmem [resolvable:$false] %s4382_s0 }
0x11ac   : > { %s4384_s22 = scalar_lea.vmem %s4383_s0, 256  ;;  %p4385_p4 = scmp.lt.s32.totalorder %s5070_s3, %s4383_s0 }
0x11ad   : > { %p4380_p2 = pnand %p4379_p1, %p4587_p5  ;;  %p4386_p7 = scmp.lt.s32.totalorder %s4384_s22, %s4378_s20 }
0x11af   : > { %p4381_p3 = pneg %p4380_p2  ;;  %p4387_p8 = por %p4386_p7, %p4385_p4 }
0x11b1   : > { %p4388_p9 = pnand %p4387_p8, %p4381_p3 }
0x1226   : > { %v3456_v7 = vpop.xlane.xlu0 %3455 }
0x1227   : > { %v3457_v8 = vmul.f32 0.03125, %v3456_v7 }
0x1229   : > { %v3458_v9 = vadd.f32 1e-05, %v3457_v8 }
0x122b   : > { %4348 = vrsqrt.f32 %v3458_v9 }
0x1235   : > { %v4349_v10 = vpop.eup %4348 }
0x1236   : > { %v3460_v11 = vmul.f32 %v4349_v10, %v3452_v4 }
0x1238   : > { %3461 = vst.msk [vmem:[%s706_s29] sm:$0xff] %vm1734_vm3, %v3460_v11 }
0x1239   : > { %4391 = shalt.err (!%p4388_p9)
}
0x123a   : > { %s4392_s25 = scalar_lea.hbm %s5068_s1, 128  ;;  %s4396_s23 = scalar_lea.hbm %s5130_s18, 256 }
0x123b   : > { %p4393_p10 = scmp.ne.s32.totalorder %s5068_s1, %s4392_s25  ;;  %p4397_p13 = scmp.lt.u32.totalorder %s5068_s1, %s5130_s18 }
0x123c   : > { %p4398_p0 = scmp.lt.u32.totalorder %s4396_s23, %s4392_s25  ;;  %p4400_p2 = scmp.lt.u32.totalorder %s4392_s25, %s5068_s1 }
0x123d   : > { %p4394_p11 = pnand %p4393_p10, %p4587_p5 }
0x123e   : > { %p4399_p1 = por %p4398_p0, %p4397_p13 }
0x123f   : > { %p4395_p12 = pneg %p4394_p11 }
0x1240   : > { %p4401_p3 = por %p4400_p2, %p4399_p1 }
0x1242   : > { %p4402_p4 = pnand %p4401_p3, %p4395_p12 }
0x1244   : > { %4405 = shalt.err (!%p4402_p4)
}
0x1245   : > { %4283 = dma.vmem_to_hbm [thread:$0]  (%p4587_p5), %s5070_s3, 128, %s5068_s1, %s3468_s19  }
0x1246 PF: > { %p4293_p7 = scmp.ge.s32.totalorder %s4444_s30, 2  ;;  %s3506_s21 = sand.u32 1, %s4432_s27  }
0x1247   : > { %s3507_s0 = scalar_lea.sflag [#allocation3], %s3506_s21 }
0x1248   : > { %p4287_p8 = pnand %p4293_p7, %p4591_p6 }
0x124a   : > { %4423 = dma.done.wait (!%p4287_p8), %s3507_s0, 128  }
0x124b   : > { %4425 = vsyncadd (!%p4287_p8), %s3507_s0, 4294967168  ;;  %s3516_s22 = scalar_lea.sflag [#allocation5], %s3506_s21 }
0x124c   : > { %4427 = dma.done.wait (!%p4287_p8), %s3516_s22, 128  }
0x124d   : > { %4429 = vsyncadd (!%p4287_p8), %s3516_s22, 4294967168  ;;  %s5156_s30 = sld [smem:[#allocation9_spill]]  ;;  %s5157_s2 = sld [smem:[#allocation8_spill]] }
0x124e   : > { %s5158_s29 = sld [smem:[#allocation10_spill]]  ;;  %s5159_s27 = smov %s4436_s28 }
0x1253   : > { %p32_p5 = scmp.ge.s32.totalorder %s5156_s30, 4   ;;  %s5160_s28 = smov %s5157_s2 }
0x1255   :  { %34 = sbr.rel (!%p32_p5) target bundleno = 11 (0xb), region = 167 }
0x125c   :  { %3521 = vsyncpa [#allocation3], 1 }
0x125d   :  { %3523 = vsyncpa [#allocation3 + $0x1], 1 }
0x125e   :  { %3524 = vsyncpa [#allocation5], 1 }
0x125f   :  { %3526 = vsyncpa [#allocation5 + $0x1], 1 }

</bundles_post_ra>
